<compile_context>
chip_gen: v6e
topology: v6e:2x2x1
jax: 0.10.0
libtpu: 0.0.40
codegen_flags: <defaults>
</compile_context>

<pallas_src>
import jax
import jax.numpy as jnp
from jax import lax
from jax.experimental import pallas as pl
from jax.experimental.pallas import tpu as pltpu

HIDDEN = 512
BN_EPS = 1e-5
LANE = 128
TM = 128  # batch tile (MXU M dimension)


def _round_up(n, m):
    return ((n + m - 1) // m) * m


# ---------------------------------------------------------------------------
# Kernel
# ---------------------------------------------------------------------------
def _head_kernel(x_ref, w1_ref, b1_ref, w2_ref, b2_ref, o_ref):
    # BN1/BN2 already folded into (w1, b1) / (w2, b2); Dropout is identity (eval).
    x = x_ref[...].astype(jnp.bfloat16)                                   # (TM, in_f)
    h = jnp.dot(x, w1_ref[...], preferred_element_type=jnp.float32) + b1_ref[...]
    h = jnp.maximum(h, 0.0).astype(jnp.bfloat16)                          # ReLU
    out = jnp.dot(h, w2_ref[...], preferred_element_type=jnp.float32) + b2_ref[...]
    o_ref[...] = out                                                      # (TM, n_pad) f32


@jax.jit
def _head_pallas(x_pad, w1, b1, w2, b2):
    B_pad, in_f = x_pad.shape
    n_pad = w2.shape[1]
    grid = (B_pad // TM,)

    # Size VMEM to actual double-buffered use + headroom; stay under v7x's 64 MiB.
    per_step_bytes = (TM * in_f * 4            # x block (f32)
                      + w1.size * 2            # bf16 weights
                      + w2.size * 2
                      + (HIDDEN + n_pad) * 4   # biases (f32)
                      + TM * n_pad * 4)        # output block (f32)
    vmem_bytes = int(min(2 * per_step_bytes + (8 << 20), 48 << 20))

    return pl.pallas_call(
        _head_kernel,
        out_shape=jax.ShapeDtypeStruct((B_pad, n_pad), jnp.float32),
        grid=grid,
        in_specs=[
            pl.BlockSpec((TM, in_f), lambda i: (i, 0)),       # x tile over batch
            pl.BlockSpec((in_f, HIDDEN), lambda i: (0, 0)),   # W1' (resident)
            pl.BlockSpec((1, HIDDEN), lambda i: (0, 0)),      # b1'
            pl.BlockSpec((HIDDEN, n_pad), lambda i: (0, 0)),  # W2' (lane-padded)
            pl.BlockSpec((1, n_pad), lambda i: (0, 0)),       # b2'
        ],
        out_specs=pl.BlockSpec((TM, n_pad), lambda i: (i, 0)),
        compiler_params=pltpu.CompilerParams(
            dimension_semantics=("parallel",),
            vmem_limit_bytes=vmem_bytes),
    )(x_pad, w1, b1, w2, b2)


def head_forward(x, kernel_params, out_f):
    """x: (B, C, H, W) or (B, in_f). Returns (B, out_f) float32 (eval-mode Head)."""
    x_flat = x.reshape(x.shape[0], -1)                 # nn.Flatten
    B = x_flat.shape[0]
    B_pad = _round_up(max(B, 1), TM)
    x_pad = jnp.pad(x_flat, ((0, B_pad - B), (0, 0)))  # fill MXU M dimension
    out = _head_pallas(x_pad, kernel_params["w1"], kernel_params["b1"],
                       kernel_params["w2"], kernel_params["b2"])
    return out[:B, :out_f]                             # drop batch + lane padding


# ---------------------------------------------------------------------------
# Parameters: PyTorch-style init, then a ONE-TIME constant fold of the BNs
# ---------------------------------------------------------------------------
def init_params(key, in_f, out_f):
    """Deterministic, non-trivial parameters (shapes mirror the PyTorch module)."""
    ks = jax.random.split(key, 8)
    w1_t = jax.random.normal(ks[0], (HIDDEN, in_f), jnp.float32) * (1.0 / jnp.sqrt(in_f))
    w2_t = jax.random.normal(ks[1], (out_f, HIDDEN), jnp.float32) * (1.0 / jnp.sqrt(HIDDEN))
    return {
        "w1": w1_t.T,                                                   # (in_f, 512)
        "b1": (jax.random.normal(ks[2], (1, HIDDEN)) * 0.02).astype(jnp.float32),
        "w2": w2_t.T,                                                   # (512, out_f)
        "b2": (jax.random.normal(ks[3], (1, out_f)) * 0.02).astype(jnp.float32),
        "bn1_gamma": 1.0 + 0.1 * jax.random.normal(ks[4], (1, in_f), jnp.float32),
        "bn1_beta":  0.05 * jax.random.normal(ks[5], (1, in_f), jnp.float32),
        "bn1_mean":  0.1 * jnp.arange(in_f, dtype=jnp.float32).reshape(1, in_f) / in_f,
        "bn1_var":   jnp.full((1, in_f), 1.5, jnp.float32),
        "bn2_gamma": 1.0 + 0.1 * jax.random.normal(ks[6], (1, HIDDEN), jnp.float32),
        "bn2_beta":  0.05 * jax.random.normal(ks[7], (1, HIDDEN), jnp.float32),
        "bn2_mean":  jnp.full((1, HIDDEN), 0.2, jnp.float32),
        "bn2_var":   jnp.full((1, HIDDEN), 0.8, jnp.float32),
    }


def fold_params(params, out_f):
    """One-time constant fold of eval-mode BN1/BN2 into the Linear weights/biases.

    BN(x) = x*scale + shift with scale = gamma*rsqrt(var+eps), shift = beta - mean*scale.
    BN -> Linear  ==>  W' = scale[:,None]*W,  b' = b + shift @ W.
    Returns bf16 weights (second Linear lane-padded to 128 cols) + f32 biases.
    """
    scale1 = params["bn1_gamma"] * lax.rsqrt(params["bn1_var"] + BN_EPS)   # (1, in_f)
    shift1 = params["bn1_beta"] - params["bn1_mean"] * scale1              # (1, in_f)
    w1 = scale1.reshape(-1, 1) * params["w1"]                              # (in_f, 512)
    b1 = params["b1"] + shift1 @ params["w1"]                              # (1, 512)

    scale2 = params["bn2_gamma"] * lax.rsqrt(params["bn2_var"] + BN_EPS)   # (1, 512)
    shift2 = params["bn2_beta"] - params["bn2_mean"] * scale2              # (1, 512)
    w2 = scale2.reshape(-1, 1) * params["w2"]                              # (512, out_f)
    b2 = params["b2"] + shift2 @ params["w2"]                              # (1, out_f)

    n_pad = _round_up(out_f, LANE)                    # lane-dense output store
    w2 = jnp.pad(w2, ((0, 0), (0, n_pad - out_f)))
    b2 = jnp.pad(b2, ((0, 0), (0, n_pad - out_f)))

    return {
        "w1": w1.astype(jnp.bfloat16),
        "b1": b1.astype(jnp.float32),
        "w2": w2.astype(jnp.bfloat16),
        "b2": b2.astype(jnp.float32),
    }


# ---------------------------------------------------------------------------
# References
# ---------------------------------------------------------------------------
def reference_forward_f32(x_flat, params):
    """Unfused f32 eval-mode forward (mirrors the PyTorch module exactly)."""
    h = (x_flat - params["bn1_mean"]) * lax.rsqrt(params["bn1_var"] + BN_EPS) \
        * params["bn1_gamma"] + params["bn1_beta"]
    h = h @ params["w1"] + params["b1"]
    h = jnp.maximum(h, 0.0)
    h = (h - params["bn2_mean"]) * lax.rsqrt(params["bn2_var"] + BN_EPS) \
        * params["bn2_gamma"] + params["bn2_beta"]
    return h @ params["w2"] + params["b2"]


def reference_forward_folded(x_flat, kp, out_f):
    """Pure-JAX reference with the same folded bf16 weights the kernel uses."""
    h = jnp.dot(x_flat.astype(jnp.bfloat16), kp["w1"],
                preferred_element_type=jnp.float32) + kp["b1"]
    h = jnp.maximum(h, 0.0).astype(jnp.bfloat16)
    out = jnp.dot(h, kp["w2"], preferred_element_type=jnp.float32) + kp["b2"]
    return out[:, :out_f]


if __name__ == "__main__":
    key = jax.random.PRNGKey(0)
    k_x, k_p = jax.random.split(key)

    # Small NCHW input, e.g. output of a conv backbone: (B=2, C=4, H=16, W=16)
    B, C, H, W = 2, 4, 16, 16
    in_f = C * H * W          # 1024
    out_f = 10

    x = jax.random.normal(k_x, (B, C, H, W), jnp.float32)
    params = init_params(k_p, in_f, out_f)
    kernel_params = fold_params(params, out_f)     # one-time BN fold + bf16 + lane pad

    out = head_forward(x, kernel_params, out_f)
    out = jax.block_until_ready(out)
    assert out.shape == (B, out_f)

    x_flat = x.reshape(B, -1)
    # Tight check vs a JAX reference using the identical folded bf16 weights.
    ref_folded = reference_forward_folded(x_flat, kernel_params, out_f)
    assert jnp.allclose(out, ref_folded, atol=1e-3, rtol=1e-3), \
        "mismatch vs folded bf16 reference"
    # Loose check vs the original unfused f32 eval-mode module (bf16 weight error).
    ref_f32 = reference_forward_f32(x_flat, params)
    assert jnp.allclose(out, ref_f32, atol=5e-2, rtol=5e-2), \
        "mismatch vs f32 eval-mode reference"

    print("KERNEL_OK")
</pallas_src>

<mosaic_0001>
module attributes {stable_mosaic.version = 11 : i64} {
  func.func @_head_kernel(%arg0: i32, %arg1: memref<128x1024xf32, #tpu.memory_space<vmem>>, %arg2: memref<1024x512xbf16, #tpu.memory_space<vmem>>, %arg3: memref<1x512xf32, #tpu.memory_space<vmem>>, %arg4: memref<512x128xbf16, #tpu.memory_space<vmem>>, %arg5: memref<1x128xf32, #tpu.memory_space<vmem>>, %arg6: memref<128x128xf32, #tpu.memory_space<vmem>>) attributes {dimension_semantics = [#tpu.dimension_semantics<parallel>], iteration_bounds = array<i64: 1>, scalar_prefetch = 0 : i64, scratch_operands = 0 : i64, tpu.core_type = #tpu.core_type<tc>, window_params = [{transform_indices = @transform_0, window_bounds = array<i64: 128, 1024>}, {pipeline_mode = #tpu.pipeline_mode<synchronous>, transform_indices = @transform_1, window_bounds = array<i64: 1024, 512>}, {pipeline_mode = #tpu.pipeline_mode<synchronous>, transform_indices = @transform_2, window_bounds = array<i64: 1, 512>}, {pipeline_mode = #tpu.pipeline_mode<synchronous>, transform_indices = @transform_3, window_bounds = array<i64: 512, 128>}, {pipeline_mode = #tpu.pipeline_mode<synchronous>, transform_indices = @transform_4, window_bounds = array<i64: 1, 128>}, {transform_indices = @transform_5, window_bounds = array<i64: 128, 128>}]} {
    %c0 = arith.constant 0 : index
    %c0_0 = arith.constant 0 : index
    %0 = vector.load %arg1[%c0, %c0_0] : memref<128x1024xf32, #tpu.memory_space<vmem>>, vector<128x1024xf32>
    %1 = arith.truncf %0 : vector<128x1024xf32> to vector<128x1024xbf16>
    %c0_1 = arith.constant 0 : index
    %c0_2 = arith.constant 0 : index
    %2 = vector.load %arg2[%c0_1, %c0_2] : memref<1024x512xbf16, #tpu.memory_space<vmem>>, vector<1024x512xbf16>
    %cst = arith.constant dense<0.000000e+00> : vector<128x512xf32>
    %3 = tpu.matmul %1, %2, %cst {dimension_numbers = #tpu.dot_dimension_numbers<[1], [0], [0], [1], [0, 0, 1, 1], [], []>} : vector<128x1024xbf16>, vector<1024x512xbf16>, vector<128x512xf32> -> vector<128x512xf32>
    %c0_3 = arith.constant 0 : index
    %c0_4 = arith.constant 0 : index
    %4 = vector.load %arg3[%c0_3, %c0_4] : memref<1x512xf32, #tpu.memory_space<vmem>>, vector<1x512xf32>
    %5 = vector.broadcast %4 : vector<1x512xf32> to vector<128x512xf32>
    %6 = arith.addf %3, %5 : vector<128x512xf32>
    %cst_5 = arith.constant 0.000000e+00 : f32
    %7 = vector.broadcast %cst_5 : f32 to vector<128x512xf32>
    %8 = arith.maximumf %6, %7 : vector<128x512xf32>
    %9 = arith.truncf %8 : vector<128x512xf32> to vector<128x512xbf16>
    %c0_6 = arith.constant 0 : index
    %c0_7 = arith.constant 0 : index
    %10 = vector.load %arg4[%c0_6, %c0_7] : memref<512x128xbf16, #tpu.memory_space<vmem>>, vector<512x128xbf16>
    %cst_8 = arith.constant dense<0.000000e+00> : vector<128x128xf32>
    %11 = tpu.matmul %9, %10, %cst_8 {dimension_numbers = #tpu.dot_dimension_numbers<[1], [0], [0], [1], [0, 0, 1, 1], [], []>} : vector<128x512xbf16>, vector<512x128xbf16>, vector<128x128xf32> -> vector<128x128xf32>
    %c0_9 = arith.constant 0 : index
    %c0_10 = arith.constant 0 : index
    %12 = vector.load %arg5[%c0_9, %c0_10] : memref<1x128xf32, #tpu.memory_space<vmem>>, vector<1x128xf32>
    %13 = vector.broadcast %12 : vector<1x128xf32> to vector<128x128xf32>
    %14 = arith.addf %11, %13 : vector<128x128xf32>
    %c0_11 = arith.constant 0 : index
    %c0_12 = arith.constant 0 : index
    %15 = vector.load %arg6[%c0_11, %c0_12] : memref<128x128xf32, #tpu.memory_space<vmem>>, vector<128x128xf32>
    tpu.vector_store %arg6[%c0_11, %c0_12], %14 {strides = array<i32>} : memref<128x128xf32, #tpu.memory_space<vmem>>, vector<128x128xf32>,
    return
  }
  func.func @transform_0(%arg0: i32) -> (i32, i32) {
    %c0_i32 = arith.constant 0 : i32
    %c0_i32_0 = arith.constant 0 : i32
    return %arg0, %c0_i32 : i32, i32
  }
  func.func @transform_1(%arg0: i32) -> (i32, i32) {
    %c0_i32 = arith.constant 0 : i32
    %c0_i32_0 = arith.constant 0 : i32
    %c0_i32_1 = arith.constant 0 : i32
    return %c0_i32, %c0_i32_0 : i32, i32
  }
  func.func @transform_2(%arg0: i32) -> (i32, i32) {
    %c0_i32 = arith.constant 0 : i32
    %c0_i32_0 = arith.constant 0 : i32
    %c0_i32_1 = arith.constant 0 : i32
    return %c0_i32, %c0_i32_0 : i32, i32
  }
  func.func @transform_3(%arg0: i32) -> (i32, i32) {
    %c0_i32 = arith.constant 0 : i32
    %c0_i32_0 = arith.constant 0 : i32
    %c0_i32_1 = arith.constant 0 : i32
    return %c0_i32, %c0_i32_0 : i32, i32
  }
  func.func @transform_4(%arg0: i32) -> (i32, i32) {
    %c0_i32 = arith.constant 0 : i32
    %c0_i32_0 = arith.constant 0 : i32
    %c0_i32_1 = arith.constant 0 : i32
    return %c0_i32, %c0_i32_0 : i32, i32
  }
  func.func @transform_5(%arg0: i32) -> (i32, i32) {
    %c0_i32 = arith.constant 0 : i32
    %c0_i32_0 = arith.constant 0 : i32
    return %arg0, %c0_i32 : i32, i32
  }
}

</mosaic_0001>

<bundles_post_ra>
// kernel: _head_pallas.1
= control target key start
LH: loop header
LB: loop body
LE: loop exit
PB: predicated region body
PF: predicated region fallthrough
CT: control target
= control target key end

     0   :  { %10 = vsyncpa [#allocation3], 0  ;;  %s4976_s0 = inlined_call_operand.hbm [shape: f32[128,1024], index: 0, kind: input, shape index: {}]   ;;  %s4977_s1 = inlined_call_operand.hbm [shape: bf16[1024,512], index: 1, kind: input, shape index: {}]   ;;  %s4978_s2 = inlined_call_operand.hbm [shape: f32[1,512], index: 2, kind: input, shape index: {}]   ;;  %s4979_s3 = inlined_call_operand.hbm [shape: bf16[512,128], index: 3, kind: input, shape index: {}]   ;;  %s4980_s4 = inlined_call_operand.vmem [shape: f32[1,128], index: 4, kind: input, shape index: {}]   ;;  %s4981_s5 = inlined_call_operand.hbm [shape: f32[128,128], index: 5, kind: output, shape index: {}]  }
   0x1   :  { %11 = vsyncpa [#allocation6], 0 }
   0x2   :  { %12 = vsyncpa [#allocation9], 0 }
   0x3   :  { %13 = vsyncpa [#allocation4], 0  ;;  %s4270_s18 = smov [#allocation5]  }
   0x4   :  { %s31_s19 = sshll.u32 %s4270_s18, 4  ;;  %s32_s19 = int_to_ptr.vmem [resolvable:$true] %s31_s19 }
   0x5   :  { %s4170_s20 = scalar_lea.vmem %s32_s19, 32768  ;;  %p4175_p1 = scmp.lt.s32.totalorder %s32_s19, %s32_s19 }
   0x6   :  { %p4171_p0 = scmp.ne.s32.totalorder %s32_s19, %s4170_s20  ;;  %p4176_p2 = scmp.lt.s32.totalorder %s4170_s20, %s4170_s20 }
   0x8   :  { %p4177_p3 = por %p4176_p2, %p4175_p1 }
   0xa   :  { %p4178_p4 = pnand %p4177_p3, %p4171_p0 }
   0xc   :  { %4181 = shalt.err (!%p4178_p4)
}
   0xd   :  { %s4271_s21 = smov 256   ;;  %s4272_s22 = smov 16  }
   0xe   :  { %37 = dma.hbm_to_vmem [thread:$0]  %s4977_s1, 32768, %s32_s19, [#allocation6], %s4271_s21, %s4271_s21, %s4272_s22  }
   0xf   :  { %s4273_s25 = smov [#allocation2]  }
  0x10   :  { %s19_s26 = sshll.u32 %s4273_s25, 4  ;;  %s20_s26 = int_to_ptr.vmem [resolvable:$true] %s19_s26 }
  0x11   :  { %s4190_s27 = scalar_lea.vmem %s20_s26, 16384  ;;  %p4195_p6 = scmp.lt.s32.totalorder %s20_s26, %s20_s26 }
  0x12   :  { %p4191_p5 = scmp.ne.s32.totalorder %s20_s26, %s4190_s27  ;;  %p4196_p7 = scmp.lt.s32.totalorder %s4190_s27, %s4190_s27 }
  0x14   :  { %p4197_p8 = por %p4196_p7, %p4195_p6 }
  0x16   :  { %p4198_p9 = pnand %p4197_p8, %p4191_p5 }
  0x18   :  { %4201 = shalt.err (!%p4198_p9)
}
  0x19   :  { %s4274_s28 = smov 1024   ;;  %s4275_s29 = smov 64  }
  0x1a   :  { %25 = dma.hbm_to_vmem [thread:$0]  %s4976_s0, 16384, %s20_s26, [#allocation3], %s4274_s28, %s4274_s28, %s4275_s29  }
  0x1b   :  { %s4276_s7 = smov [#allocation7]   ;;  %s4277_s9 = smov [#allocation8]  }
  0x1c   :  { %s44_s8 = sshll.u32 %s4276_s7, 4  ;;  %s53_s1 = sshll.u32 %s4277_s9, 4  ;;  %s45_s8 = int_to_ptr.vmem [resolvable:$true] %s44_s8  ;;  %s54_s1 = int_to_ptr.vmem [resolvable:$true] %s53_s1 }
  0x1d   :  { %s4210_s10 = scalar_lea.vmem %s45_s8, 64  ;;  %p4215_p11 = scmp.lt.s32.totalorder %s45_s8, %s45_s8 }
  0x1e   :  { %p4211_p10 = scmp.ne.s32.totalorder %s45_s8, %s4210_s10  ;;  %p4216_p12 = scmp.lt.s32.totalorder %s4210_s10, %s4210_s10 }
  0x20   :  { %p4217_p13 = por %p4216_p12, %p4215_p11 }
  0x22   :  { %p4218_p0 = pnand %p4217_p13, %p4211_p10 }
  0x24   :  { %4221 = shalt.err (!%p4218_p0)
}
  0x25   :  { %47 = dma.hbm_to_vmem [thread:$0]  %s4978_s2, 64, %s45_s8, [#allocation6]  }
  0x26   :  { %s4230_s13 = scalar_lea.vmem %s54_s1, 4096  ;;  %p4235_p2 = scmp.lt.s32.totalorder %s54_s1, %s54_s1 }
  0x27   :  { %p4231_p1 = scmp.ne.s32.totalorder %s54_s1, %s4230_s13  ;;  %p4236_p3 = scmp.lt.s32.totalorder %s4230_s13, %s4230_s13 }
  0x29   :  { %p4237_p4 = por %p4236_p3, %p4235_p2 }
  0x2b   :  { %p4238_p5 = pnand %p4237_p4, %p4231_p1 }
  0x2d   :  { %4241 = shalt.err (!%p4238_p5)
}
  0x2e   :  { %s4278_s0 = smov 4  }
  0x2f   :  { %59 = dma.hbm_to_vmem [thread:$0]  %s4979_s3, 4096, %s54_s1, [#allocation9], %s4275_s29, %s4275_s29, %s4278_s0  }
  0x30   :  { %4262 = dma.done.wait [#allocation3], 16384  }
  0x31   :  { %4263 = vsyncadd [#allocation3], 4294950912 }
  0x32   :  { %4264 = dma.done.wait [#allocation6], 32832  }
  0x33   :  { %4265 = vsyncadd [#allocation6], 4294934464 }
  0x34   :  { %4266 = dma.done.wait [#allocation9], 4096  }
  0x35   :  { %4267 = vsyncadd [#allocation9], 4294963200  ;;  %v3746_v0 = vld [vmem:[#allocation5 + $0xe4] ss:$16 sps:$4 sm:$0xff]   ;;  %v3750_v2 = vld [vmem:[#allocation5 + $0xe0] ss:$16 sps:$4 sm:$0xff]  }
  0x36   :  { %v3748_v1 = vld [vmem:[#allocation5 + $0x2e4] ss:$16 sps:$4 sm:$0xff]   ;;  %1825 = vmatprep.subr.bf16.mxu0 %v3746_v0  ;;  %v3751_v3 = vld [vmem:[#allocation5 + $0x2e0] ss:$16 sps:$4 sm:$0xff]   ;;  %v76_v46 = vld [vmem:[#allocation2 + $0x8] sm:$0xff] }
  0x37   :  { %1938 = vmatprep.subr.bf16.mxu1 %v3748_v1  ;;  %v3752_v4 = vld [vmem:[#allocation5 + $0xc4] ss:$16 sps:$4 sm:$0xff]   ;;  %1826 = vmatpush1.bf16.msra.mxu0 %v3750_v2  ;;  %v3756_v6 = vld [vmem:[#allocation5 + $0xc0] ss:$16 sps:$4 sm:$0xff]   ;;  %v84_v47 = vld [vmem:[#allocation2 + $0x48] sm:$0xff] }
  0x38   :  { %1939 = vmatpush1.bf16.msra.mxu1 %v3751_v3  ;;  %v3754_v5 = vld [vmem:[#allocation5 + $0x2c4] ss:$16 sps:$4 sm:$0xff]   ;;  %1827 = vmatprep.subr.bf16.mxu0 %v3752_v4  ;;  %v3757_v7 = vld [vmem:[#allocation5 + $0x2c0] ss:$16 sps:$4 sm:$0xff]   ;;  %v78_v48 = vld [vmem:[#allocation2 + $0x18] sm:$0xff]  ;;  %v4324_v53 = vpack.c.bf16 %v84_v47, %v76_v46 }
  0x39   :  { %1940 = vmatprep.subr.bf16.mxu1 %v3754_v5  ;;  %v3758_v8 = vld [vmem:[#allocation5 + $0xa4] ss:$16 sps:$4 sm:$0xff]   ;;  %v3762_v10 = vld [vmem:[#allocation5 + $0xa0] ss:$16 sps:$4 sm:$0xff]   ;;  %v86_v49 = vld [vmem:[#allocation2 + $0x58] sm:$0xff] }
  0x3a   :  { %v3760_v9 = vld [vmem:[#allocation5 + $0x2a4] ss:$16 sps:$4 sm:$0xff]   ;;  %v3763_v11 = vld [vmem:[#allocation5 + $0x2a0] ss:$16 sps:$4 sm:$0xff]   ;;  %v4326_v54 = vpack.c.bf16 %v86_v49, %v78_v48  ;;  %1857 = vmatprep.mubr.bf16.mxu0 %v4324_v53 }
  0x3b   :  { %1828 = vmatpush1.bf16.msra.mxu0 %v3756_v6  ;;  %v3764_v12 = vld [vmem:[#allocation5 + $0x84] ss:$16 sps:$4 sm:$0xff]   ;;  %v3768_v14 = vld [vmem:[#allocation5 + $0x80] ss:$16 sps:$4 sm:$0xff]  }
  0x3c   :  { %1941 = vmatpush1.bf16.msra.mxu1 %v3757_v7  ;;  %1829 = vmatprep.subr.bf16.mxu0 %v3758_v8  ;;  %v3766_v13 = vld [vmem:[#allocation5 + $0x284] ss:$16 sps:$4 sm:$0xff]   ;;  %v3769_v15 = vld [vmem:[#allocation5 + $0x280] ss:$16 sps:$4 sm:$0xff]  }
  0x3d   :  { %1942 = vmatprep.subr.bf16.mxu1 %v3760_v9  ;;  %v3770_v16 = vld [vmem:[#allocation5 + $0x64] ss:$16 sps:$4 sm:$0xff]   ;;  %v3774_v18 = vld [vmem:[#allocation5 + $0x60] ss:$16 sps:$4 sm:$0xff]   ;;  %1970 = vmatprep.mubr.bf16.mxu1 %v4326_v54 }
  0x3e   :  { %v3772_v17 = vld [vmem:[#allocation5 + $0x264] ss:$16 sps:$4 sm:$0xff]   ;;  %v3775_v19 = vld [vmem:[#allocation5 + $0x260] ss:$16 sps:$4 sm:$0xff]  }
  0x3f   :  { %1830 = vmatpush1.bf16.msra.mxu0 %v3762_v10  ;;  %v3776_v20 = vld [vmem:[#allocation5 + $0x44] ss:$16 sps:$4 sm:$0xff]   ;;  %v3780_v22 = vld [vmem:[#allocation5 + $0x40] ss:$16 sps:$4 sm:$0xff]  }
  0x40   :  { %1943 = vmatpush1.bf16.msra.mxu1 %v3763_v11  ;;  %1831 = vmatprep.subr.bf16.mxu0 %v3764_v12  ;;  %v3778_v21 = vld [vmem:[#allocation5 + $0x244] ss:$16 sps:$4 sm:$0xff]   ;;  %v3781_v23 = vld [vmem:[#allocation5 + $0x240] ss:$16 sps:$4 sm:$0xff]  }
  0x41   :  { %1944 = vmatprep.subr.bf16.mxu1 %v3766_v13  ;;  %v3782_v24 = vld [vmem:[#allocation5 + $0x24] ss:$16 sps:$4 sm:$0xff]   ;;  %v3786_v26 = vld [vmem:[#allocation5 + $0x20] ss:$16 sps:$4 sm:$0xff]  }
  0x42   :  { %v3784_v25 = vld [vmem:[#allocation5 + $0x224] ss:$16 sps:$4 sm:$0xff]   ;;  %v3787_v27 = vld [vmem:[#allocation5 + $0x220] ss:$16 sps:$4 sm:$0xff]  }
  0x43   :  { %1832 = vmatpush1.bf16.msra.mxu0 %v3768_v14  ;;  %v3788_v28 = vld [vmem:[#allocation5 + $0x4] ss:$16 sps:$4 sm:$0xff]   ;;  %v3792_v30 = vld [vmem:[#allocation5] ss:$16 sps:$4 sm:$0xff]   ;;  %v92_v14 = vld [vmem:[#allocation2 + $0x88] sm:$0xff] }
  0x44   :  { %1945 = vmatpush1.bf16.msra.mxu1 %v3769_v15  ;;  %1833 = vmatprep.subr.bf16.mxu0 %v3770_v16  ;;  %v3790_v29 = vld [vmem:[#allocation5 + $0x204] ss:$16 sps:$4 sm:$0xff]   ;;  %v3793_v31 = vld [vmem:[#allocation5 + $0x200] ss:$16 sps:$4 sm:$0xff]   ;;  %v100_v15 = vld [vmem:[#allocation2 + $0xc8] sm:$0xff] }
  0x45   :  { %1946 = vmatprep.subr.bf16.mxu1 %v3772_v17  ;;  %v3794_v32 = vld [vmem:[#allocation5 + $0x1e4] ss:$16 sps:$4 sm:$0xff]   ;;  %v3798_v34 = vld [vmem:[#allocation5 + $0x1e0] ss:$16 sps:$4 sm:$0xff]  }
  0x46   :  { %v3796_v33 = vld [vmem:[#allocation5 + $0x3e4] ss:$16 sps:$4 sm:$0xff]   ;;  %v3799_v35 = vld [vmem:[#allocation5 + $0x3e0] ss:$16 sps:$4 sm:$0xff]  }
  0x47   :  { %1834 = vmatpush1.bf16.msra.mxu0 %v3774_v18  ;;  %v3800_v36 = vld [vmem:[#allocation5 + $0x1c4] ss:$16 sps:$4 sm:$0xff]   ;;  %v3804_v38 = vld [vmem:[#allocation5 + $0x1c0] ss:$16 sps:$4 sm:$0xff]   ;;  %v94_v18 = vld [vmem:[#allocation2 + $0x98] sm:$0xff] }
  0x48   :  { %1947 = vmatpush1.bf16.msra.mxu1 %v3775_v19  ;;  %1835 = vmatprep.subr.bf16.mxu0 %v3776_v20  ;;  %v3802_v37 = vld [vmem:[#allocation5 + $0x3c4] ss:$16 sps:$4 sm:$0xff]   ;;  %v3805_v39 = vld [vmem:[#allocation5 + $0x3c0] ss:$16 sps:$4 sm:$0xff]   ;;  %v102_v19 = vld [vmem:[#allocation2 + $0xd8] sm:$0xff] }
  0x49   :  { %1948 = vmatprep.subr.bf16.mxu1 %v3778_v21  ;;  %v3806_v40 = vld [vmem:[#allocation5 + $0x1a4] ss:$16 sps:$4 sm:$0xff]   ;;  %v3810_v42 = vld [vmem:[#allocation5 + $0x1a0] ss:$16 sps:$4 sm:$0xff]  }
  0x4a   :  { %v3808_v41 = vld [vmem:[#allocation5 + $0x3a4] ss:$16 sps:$4 sm:$0xff]   ;;  %v3811_v43 = vld [vmem:[#allocation5 + $0x3a0] ss:$16 sps:$4 sm:$0xff]  }
  0x4b   :  { %1836 = vmatpush1.bf16.msra.mxu0 %v3780_v22  ;;  %v3812_v44 = vld [vmem:[#allocation5 + $0x184] ss:$16 sps:$4 sm:$0xff]   ;;  %v3816_v50 = vld [vmem:[#allocation5 + $0x180] ss:$16 sps:$4 sm:$0xff]  }
  0x4c   :  { %1949 = vmatpush1.bf16.msra.mxu1 %v3781_v23  ;;  %1837 = vmatprep.subr.bf16.mxu0 %v3782_v24  ;;  %v3814_v45 = vld [vmem:[#allocation5 + $0x384] ss:$16 sps:$4 sm:$0xff]   ;;  %v3817_v51 = vld [vmem:[#allocation5 + $0x380] ss:$16 sps:$4 sm:$0xff]   ;;  %v4334_v23 = vpack.c.bf16 %v100_v15, %v92_v14  ;;  %v4336_v24 = vpack.c.bf16 %v102_v19, %v94_v18  ;;  %v142_v18 = vld [vmem:[#allocation2 + $0x218] sm:$0xff] }
  0x4d   :  { %1950 = vmatprep.subr.bf16.mxu1 %v3784_v25  ;;  %v3818_v52 = vld [vmem:[#allocation5 + $0x164] ss:$16 sps:$4 sm:$0xff]   ;;  %v3822_v56 = vld [vmem:[#allocation5 + $0x160] ss:$16 sps:$4 sm:$0xff]   ;;  %v150_v19 = vld [vmem:[#allocation2 + $0x258] sm:$0xff] }
  0x4e   :  { %v3820_v55 = vld [vmem:[#allocation5 + $0x364] ss:$16 sps:$4 sm:$0xff]   ;;  %v3823_v57 = vld [vmem:[#allocation5 + $0x360] ss:$16 sps:$4 sm:$0xff]  }
  0x4f   :  { %1838 = vmatpush1.bf16.msra.mxu0 %v3786_v26  ;;  %v3824_v58 = vld [vmem:[#allocation5 + $0x144] ss:$16 sps:$4 sm:$0xff]   ;;  %v3828_v60 = vld [vmem:[#allocation5 + $0x140] ss:$16 sps:$4 sm:$0xff]  }
  0x50   :  { %1951 = vmatpush1.bf16.msra.mxu1 %v3787_v27  ;;  %1839 = vmatprep.subr.bf16.mxu0 %v3788_v28  ;;  %v3826_v59 = vld [vmem:[#allocation5 + $0x344] ss:$16 sps:$4 sm:$0xff]   ;;  %v3829_v61 = vld [vmem:[#allocation5 + $0x340] ss:$16 sps:$4 sm:$0xff]  }
  0x51   :  { %1952 = vmatprep.subr.bf16.mxu1 %v3790_v29  ;;  %v3830_v62 = vld [vmem:[#allocation5 + $0x124] ss:$16 sps:$4 sm:$0xff]   ;;  %v3834_v0 = vld [vmem:[#allocation5 + $0x120] ss:$16 sps:$4 sm:$0xff]  }
  0x52   :  { %v3832_v63 = vld [vmem:[#allocation5 + $0x324] ss:$16 sps:$4 sm:$0xff]   ;;  %v3835_v1 = vld [vmem:[#allocation5 + $0x320] ss:$16 sps:$4 sm:$0xff]  }
  0x53   :  { %1840 = vmatpush1.bf16.msra.mxu0 %v3792_v30  ;;  %v3836_v2 = vld [vmem:[#allocation5 + $0x104] ss:$16 sps:$4 sm:$0xff]   ;;  %v3840_v4 = vld [vmem:[#allocation5 + $0x100] ss:$16 sps:$4 sm:$0xff]  }
  0x54   :  { %1953 = vmatpush1.bf16.msra.mxu1 %v3793_v31  ;;  %1841 = vmatprep.subr.bf16.mxu0 %v3794_v32  ;;  %v3838_v3 = vld [vmem:[#allocation5 + $0x304] ss:$16 sps:$4 sm:$0xff]   ;;  %v3841_v5 = vld [vmem:[#allocation5 + $0x300] ss:$16 sps:$4 sm:$0xff]  }
  0x55   :  { %1954 = vmatprep.subr.bf16.mxu1 %v3796_v33  ;;  %v75_v6 = vld [vmem:[#allocation2] sm:$0xff]  ;;  %v77_v8 = vld [vmem:[#allocation2 + $0x10] sm:$0xff] }
  0x56   :  { %v83_v7 = vld [vmem:[#allocation2 + $0x40] sm:$0xff]  ;;  %v85_v9 = vld [vmem:[#allocation2 + $0x50] sm:$0xff] }
  0x57   :  { %1842 = vmatpush2.bf16.msra.mxu0 %v3798_v34  ;;  %v3844_v10 = vld [vmem:[#allocation5 + $0x4e4] ss:$16 sps:$4 sm:$0xff]   ;;  %v3842_v12 = vld [vmem:[#allocation5 + $0x4e0] ss:$16 sps:$4 sm:$0xff]   ;;  %v4330_v16 = vpack.c.bf16 %v83_v7, %v75_v6  ;;  %v4332_v17 = vpack.c.bf16 %v85_v9, %v77_v8  ;;  %v108_v34 = vld [vmem:[#allocation2 + $0x108] sm:$0xff] }
  0x58   :  { %1955 = vmatpush2.bf16.msra.mxu1 %v3799_v35  ;;  %1843 = vmatprep.subr.bf16.mxu0 %v3800_v36  ;;  %v3847_v11 = vld [vmem:[#allocation5 + $0x6e4] ss:$16 sps:$4 sm:$0xff]   ;;  %v3845_v13 = vld [vmem:[#allocation5 + $0x6e0] ss:$16 sps:$4 sm:$0xff]   ;;  %v116_v35 = vld [vmem:[#allocation2 + $0x148] sm:$0xff] }
  0x59   :  { %1956 = vmatprep.subr.bf16.mxu1 %v3802_v37  ;;  %v3850_v20 = vld [vmem:[#allocation5 + $0x4c4] ss:$16 sps:$4 sm:$0xff]   ;;  %v3848_v22 = vld [vmem:[#allocation5 + $0x4c0] ss:$16 sps:$4 sm:$0xff]  }
  0x5a   :  { %v3853_v21 = vld [vmem:[#allocation5 + $0x6c4] ss:$16 sps:$4 sm:$0xff]   ;;  %v3851_v25 = vld [vmem:[#allocation5 + $0x6c0] ss:$16 sps:$4 sm:$0xff]  }
  0x5b   :  { %1844 = vmatpush2.bf16.msra.mxu0 %v3804_v38  ;;  %v91_v26 = vld [vmem:[#allocation2 + $0x80] sm:$0xff]  ;;  %v93_v28 = vld [vmem:[#allocation2 + $0x90] sm:$0xff]  ;;  %v110_v38 = vld [vmem:[#allocation2 + $0x118] sm:$0xff] }
  0x5c   :  { %1957 = vmatpush2.bf16.msra.mxu1 %v3805_v39  ;;  %1845 = vmatprep.subr.bf16.mxu0 %v3806_v40  ;;  %v99_v27 = vld [vmem:[#allocation2 + $0xc0] sm:$0xff]  ;;  %v101_v29 = vld [vmem:[#allocation2 + $0xd0] sm:$0xff]  ;;  %v118_v39 = vld [vmem:[#allocation2 + $0x158] sm:$0xff] }
  0x5d   :  { %1958 = vmatprep.subr.bf16.mxu1 %v3808_v41  ;;  %v3856_v30 = vld [vmem:[#allocation5 + $0x4a4] ss:$16 sps:$4 sm:$0xff]   ;;  %v3854_v32 = vld [vmem:[#allocation5 + $0x4a0] ss:$16 sps:$4 sm:$0xff]   ;;  %v4342_v36 = vpack.c.bf16 %v99_v27, %v91_v26  ;;  %v4344_v37 = vpack.c.bf16 %v101_v29, %v93_v28  ;;  %v4372_v26 = vpack.c.bf16 %v150_v19, %v142_v18 }
  0x5e   :  { %v3859_v31 = vld [vmem:[#allocation5 + $0x6a4] ss:$16 sps:$4 sm:$0xff]   ;;  %v3857_v33 = vld [vmem:[#allocation5 + $0x6a0] ss:$16 sps:$4 sm:$0xff]  }
  0x5f   :  { %1846 = vmatpush2.bf16.msra.mxu0 %v3810_v42  ;;  %v3862_v40 = vld [vmem:[#allocation5 + $0x484] ss:$16 sps:$4 sm:$0xff]   ;;  %v3860_v42 = vld [vmem:[#allocation5 + $0x480] ss:$16 sps:$4 sm:$0xff]  }
  0x60   :  { %1959 = vmatpush2.bf16.msra.mxu1 %v3811_v43  ;;  %1847 = vmatprep.subr.bf16.mxu0 %v3812_v44  ;;  %v3865_v41 = vld [vmem:[#allocation5 + $0x684] ss:$16 sps:$4 sm:$0xff]   ;;  %v4346_v43 = vpack.c.bf16 %v116_v35, %v108_v34  ;;  %v4348_v44 = vpack.c.bf16 %v118_v39, %v110_v38  ;;  %v3887_v27 = vld [vmem:[#allocation5 + $0x600] ss:$16 sps:$4 sm:$0xff]   ;;  %v156_v38 = vld [vmem:[#allocation2 + $0x288] sm:$0xff] }
  0x61   :  { %1960 = vmatprep.subr.bf16.mxu1 %v3814_v45  ;;  %v3863_v45 = vld [vmem:[#allocation5 + $0x680] ss:$16 sps:$4 sm:$0xff]   ;;  %v3880_v8 = vld [vmem:[#allocation5 + $0x424] ss:$16 sps:$4 sm:$0xff]   ;;  %v164_v39 = vld [vmem:[#allocation2 + $0x2c8] sm:$0xff] }
  0x62   :  { %v107_v46 = vld [vmem:[#allocation2 + $0x100] sm:$0xff]  ;;  %v109_v48 = vld [vmem:[#allocation2 + $0x110] sm:$0xff] }
  0x63   :  { %1848 = vmatpush2.bf16.msra.mxu0 %v3816_v50  ;;  %v115_v47 = vld [vmem:[#allocation2 + $0x140] sm:$0xff]  ;;  %v117_v49 = vld [vmem:[#allocation2 + $0x150] sm:$0xff] }
  0x64   :  { %1961 = vmatpush2.bf16.msra.mxu1 %v3817_v51  ;;  %1849 = vmatprep.subr.bf16.mxu0 %v3818_v52  ;;  %v3868_v50 = vld [vmem:[#allocation5 + $0x464] ss:$16 sps:$4 sm:$0xff]   ;;  %v3866_v52 = vld [vmem:[#allocation5 + $0x460] ss:$16 sps:$4 sm:$0xff]  }
  0x65   :  { %1962 = vmatprep.subr.bf16.mxu1 %v3820_v55  ;;  %v3871_v51 = vld [vmem:[#allocation5 + $0x664] ss:$16 sps:$4 sm:$0xff]   ;;  %v3869_v55 = vld [vmem:[#allocation5 + $0x660] ss:$16 sps:$4 sm:$0xff]  }
  0x66   :  { %v125_v6 = vld [vmem:[#allocation2 + $0x190] sm:$0xff]  ;;  %v139_v28 = vld [vmem:[#allocation2 + $0x200] sm:$0xff] }
  0x67   :  { %1850 = vmatpush2.bf16.msra.mxu0 %v3822_v56  ;;  %v124_v56 = vld [vmem:[#allocation2 + $0x188] sm:$0xff]  ;;  %v133_v7 = vld [vmem:[#allocation2 + $0x1d0] sm:$0xff]  ;;  %v147_v29 = vld [vmem:[#allocation2 + $0x240] sm:$0xff] }
  0x68   :  { %1963 = vmatpush2.bf16.msra.mxu1 %v3823_v57  ;;  %1851 = vmatprep.subr.bf16.mxu0 %v3824_v58  ;;  %v132_v57 = vld [vmem:[#allocation2 + $0x1c8] sm:$0xff]  ;;  %v4354_v58 = vpack.c.bf16 %v115_v47, %v107_v46  ;;  %v3883_v9 = vld [vmem:[#allocation5 + $0x624] ss:$16 sps:$4 sm:$0xff]   ;;  %v4368_v15 = vpack.c.bf16 %v133_v7, %v125_v6  ;;  %v3890_v34 = vld [vmem:[#allocation5 + $0x5e0] ss:$16 sps:$4 sm:$0xff]  }
  0x69   :  { %1964 = vmatprep.subr.bf16.mxu1 %v3826_v59  ;;  %v4356_v59 = vpack.c.bf16 %v117_v49, %v109_v48  ;;  %v3893_v35 = vld [vmem:[#allocation5 + $0x7e0] ss:$16 sps:$4 sm:$0xff]   ;;  %v3898_v46 = vld [vmem:[#allocation5 + $0x5c4] ss:$16 sps:$4 sm:$0xff]   ;;  %v4382_v49 = vpack.c.bf16 %v164_v39, %v156_v38  ;;  %v174_v6 = vld [vmem:[#allocation2 + $0x318] sm:$0xff] }
  0x6a   :  { %v3901_v47 = vld [vmem:[#allocation5 + $0x7c4] ss:$16 sps:$4 sm:$0xff]   ;;  %v3896_v48 = vld [vmem:[#allocation5 + $0x5c0] ss:$16 sps:$4 sm:$0xff]   ;;  %v182_v7 = vld [vmem:[#allocation2 + $0x358] sm:$0xff] }
  0x6b   :  { %1852 = vmatpush2.bf16.msra.mxu0 %v3828_v60  ;;  %v126_v60 = vld [vmem:[#allocation2 + $0x198] sm:$0xff]  ;;  %v171_v18 = vld [vmem:[#allocation2 + $0x300] sm:$0xff] }
  0x6c   :  { %1965 = vmatpush2.bf16.msra.mxu1 %v3829_v61  ;;  %1853 = vmatprep.subr.bf16.mxu0 %v3830_v62  ;;  %v134_v61 = vld [vmem:[#allocation2 + $0x1d8] sm:$0xff]  ;;  %v3874_v62 = vld [vmem:[#allocation5 + $0x444] ss:$16 sps:$4 sm:$0xff]  }
  0x6d   :  { %1966 = vmatprep.subr.bf16.mxu1 %v3832_v63  ;;  %v3877_v63 = vld [vmem:[#allocation5 + $0x644] ss:$16 sps:$4 sm:$0xff]  }
  0x6e   :  { %v179_v19 = vld [vmem:[#allocation2 + $0x340] sm:$0xff] }
  0x6f   :  { %1854 = vmatpush2.bf16.msra.mxu0 %v3834_v0  ;;  %v3872_v0 = vld [vmem:[#allocation5 + $0x440] ss:$16 sps:$4 sm:$0xff]   ;;  %v3922_v38 = vld [vmem:[#allocation5 + $0x544] ss:$16 sps:$4 sm:$0xff]  }
  0x70   :  { %1967 = vmatpush2.bf16.msra.mxu1 %v3835_v1  ;;  %1855 = vmatprep.subr.bf16.mxu0 %v3836_v2  ;;  %v4358_v1 = vpack.c.bf16 %v132_v57, %v124_v56  ;;  %v4360_v2 = vpack.c.bf16 %v134_v61, %v126_v60  ;;  %v157_v56 = vld [vmem:[#allocation2 + $0x290] sm:$0xff] }
  0x71   :  { %1968 = vmatprep.subr.bf16.mxu1 %v3838_v3  ;;  %v3875_v3 = vld [vmem:[#allocation5 + $0x640] ss:$16 sps:$4 sm:$0xff]   ;;  %v3904_v60 = vld [vmem:[#allocation5 + $0x5a4] ss:$16 sps:$4 sm:$0xff]  }
  0x72   :  { %v165_v57 = vld [vmem:[#allocation2 + $0x2d0] sm:$0xff] }
  0x73   :  { %1856 = vmatpush2.bf16.msra.mxu0 %v3840_v4  ;;  %v123_v4 = vld [vmem:[#allocation2 + $0x180] sm:$0xff] }
  0x74   :  { %1969 = vmatpush2.bf16.msra.mxu1 %v3841_v5  ;;  %2051 = vmatprep.subr.bf16.mxu0 %v3844_v10  ;;  %v131_v5 = vld [vmem:[#allocation2 + $0x1c0] sm:$0xff] }
  0x75   :  { %2164 = vmatprep.subr.bf16.mxu1 %v3847_v11  ;;  %v3878_v10 = vld [vmem:[#allocation5 + $0x420] ss:$16 sps:$4 sm:$0xff]   ;;  %v4366_v14 = vpack.c.bf16 %v131_v5, %v123_v4  ;;  %v3907_v61 = vld [vmem:[#allocation5 + $0x7a4] ss:$16 sps:$4 sm:$0xff]   ;;  %v4392_v5 = vpack.c.bf16 %v165_v57, %v157_v56 }
  0x76   :  { %1858 = vmatmul.mubr.bf16.vlgmr.msra.gmra.mxu0 %v4330_v16  ;;  %v3881_v11 = vld [vmem:[#allocation5 + $0x620] ss:$16 sps:$4 sm:$0xff]   ;;  %v3925_v39 = vld [vmem:[#allocation5 + $0x744] ss:$16 sps:$4 sm:$0xff]  }
  0x77   :  { %1971 = vmatmul.mubr.bf16.vlgmr.msra.gmra.mxu1 %v4332_v17  ;;  %2052 = vmatpush1.bf16.msra.mxu0 %v3842_v12  ;;  %v140_v12 = vld [vmem:[#allocation2 + $0x208] sm:$0xff]  ;;  %v3928_v56 = vld [vmem:[#allocation5 + $0x524] ss:$16 sps:$4 sm:$0xff]  }
  0x78   :  { %2165 = vmatpush1.bf16.msra.mxu1 %v3845_v13  ;;  %2053 = vmatprep.subr.bf16.mxu0 %v3850_v20  ;;  %v148_v13 = vld [vmem:[#allocation2 + $0x248] sm:$0xff]  ;;  %v3886_v20 = vld [vmem:[#allocation5 + $0x404] ss:$16 sps:$4 sm:$0xff]  }
  0x79   :  { %2166 = vmatprep.subr.bf16.mxu1 %v3853_v21  ;;  %1867 = vmatprep.mubr.bf16.mxu0 %v4334_v23  ;;  %v3889_v21 = vld [vmem:[#allocation5 + $0x604] ss:$16 sps:$4 sm:$0xff]  }
  0x7a   :  { %1980 = vmatprep.mubr.bf16.mxu1 %v4336_v24  ;;  %v3931_v57 = vld [vmem:[#allocation5 + $0x724] ss:$16 sps:$4 sm:$0xff]  }
  0x7b   :  { %2054 = vmatpush1.bf16.msra.mxu0 %v3848_v22  ;;  %v3884_v22 = vld [vmem:[#allocation5 + $0x400] ss:$16 sps:$4 sm:$0xff]  }
  0x7c   :  { %2167 = vmatpush1.bf16.msra.mxu1 %v3851_v25  ;;  %2055 = vmatprep.subr.bf16.mxu0 %v3856_v30  ;;  %v4370_v25 = vpack.c.bf16 %v148_v13, %v140_v12  ;;  %v141_v30 = vld [vmem:[#allocation2 + $0x210] sm:$0xff]  ;;  %v4396_v12 = vpack.c.bf16 %v182_v7, %v174_v6  ;;  %v82_v6 = vld [vmem:[#allocation2 + $0x38] sm:$0xff] }
  0x7d   :  { %2168 = vmatprep.subr.bf16.mxu1 %v3859_v31  ;;  %v149_v31 = vld [vmem:[#allocation2 + $0x250] sm:$0xff]  ;;  %v90_v7 = vld [vmem:[#allocation2 + $0x78] sm:$0xff] }
  0x7e   :  { %1868 = vmatmul.mubr.bf16.gmra.mxu0 %v4342_v36  ;;  %v3911_v13 = vld [vmem:[#allocation5 + $0x780] ss:$16 sps:$4 sm:$0xff]  }
  0x7f   :  { %1981 = vmatmul.mubr.bf16.gmra.mxu1 %v4344_v37  ;;  %2056 = vmatpush1.bf16.msra.mxu0 %v3854_v32  ;;  %v3892_v32 = vld [vmem:[#allocation5 + $0x5e4] ss:$16 sps:$4 sm:$0xff]  }
  0x80   :  { %2169 = vmatpush1.bf16.msra.mxu1 %v3857_v33  ;;  %2057 = vmatprep.subr.bf16.mxu0 %v3862_v40  ;;  %v3895_v33 = vld [vmem:[#allocation5 + $0x7e4] ss:$16 sps:$4 sm:$0xff]   ;;  %v4378_v40 = vpack.c.bf16 %v147_v29, %v139_v28  ;;  %v3914_v28 = vld [vmem:[#allocation5 + $0x560] ss:$16 sps:$4 sm:$0xff]  }
  0x81   :  { %2170 = vmatprep.subr.bf16.mxu1 %v3865_v41  ;;  %1877 = vmatprep.mubr.bf16.mxu0 %v4346_v43  ;;  %v4380_v41 = vpack.c.bf16 %v149_v31, %v141_v30  ;;  %v3917_v29 = vld [vmem:[#allocation5 + $0x760] ss:$16 sps:$4 sm:$0xff]   ;;  %v188_v30 = vld [vmem:[#allocation2 + $0x388] sm:$0xff] }
  0x82   :  { %1990 = vmatprep.mubr.bf16.mxu1 %v4348_v44  ;;  %v196_v31 = vld [vmem:[#allocation2 + $0x3c8] sm:$0xff] }
  0x83   :  { %2058 = vmatpush1.bf16.msra.mxu0 %v3860_v42  ;;  %v158_v42 = vld [vmem:[#allocation2 + $0x298] sm:$0xff] }
  0x84   :  { %2171 = vmatpush1.bf16.msra.mxu1 %v3863_v45  ;;  %2059 = vmatprep.subr.bf16.mxu0 %v3868_v50  ;;  %v166_v45 = vld [vmem:[#allocation2 + $0x2d8] sm:$0xff] }
  0x85   :  { %2172 = vmatprep.subr.bf16.mxu1 %v3871_v51  ;;  %v4384_v50 = vpack.c.bf16 %v166_v45, %v158_v42  ;;  %v3899_v51 = vld [vmem:[#allocation5 + $0x7c0] ss:$16 sps:$4 sm:$0xff]   ;;  %v4406_v45 = vpack.c.bf16 %v196_v31, %v188_v30  ;;  %v3938_v30 = vld [vmem:[#allocation5 + $0xe8] ss:$16 sps:$4 sm:$0xff]  }
  0x86   :  { %1878 = vmatmul.mubr.bf16.gmra.mxu0 %v4354_v58  ;;  %v3920_v42 = vld [vmem:[#allocation5 + $0x540] ss:$16 sps:$4 sm:$0xff]   ;;  %v3941_v31 = vld [vmem:[#allocation5 + $0x2e8] ss:$16 sps:$4 sm:$0xff]  }
  0x87   :  { %1991 = vmatmul.mubr.bf16.gmra.mxu1 %v4356_v59  ;;  %2060 = vmatpush1.bf16.msra.mxu0 %v3866_v52  ;;  %v155_v52 = vld [vmem:[#allocation2 + $0x280] sm:$0xff] }
  0x88   :  { %2173 = vmatpush1.bf16.msra.mxu1 %v3869_v55  ;;  %2061 = vmatprep.subr.bf16.mxu0 %v3874_v62  ;;  %v163_v55 = vld [vmem:[#allocation2 + $0x2c0] sm:$0xff] }
  0x89   :  { %2174 = vmatprep.subr.bf16.mxu1 %v3877_v63  ;;  %1887 = vmatprep.mubr.bf16.mxu0 %v4358_v1  ;;  %v3902_v62 = vld [vmem:[#allocation5 + $0x5a0] ss:$16 sps:$4 sm:$0xff]   ;;  %v4390_v4 = vpack.c.bf16 %v163_v55, %v155_v52 }
  0x8a   :  { %2000 = vmatprep.mubr.bf16.mxu1 %v4360_v2  ;;  %v3905_v63 = vld [vmem:[#allocation5 + $0x7a0] ss:$16 sps:$4 sm:$0xff]  }
  0x8b   :  { %2062 = vmatpush1.bf16.msra.mxu0 %v3872_v0  ;;  %v172_v0 = vld [vmem:[#allocation2 + $0x308] sm:$0xff]  ;;  %v189_v52 = vld [vmem:[#allocation2 + $0x390] sm:$0xff] }
  0x8c   :  { %2175 = vmatpush1.bf16.msra.mxu1 %v3875_v3  ;;  %2063 = vmatprep.subr.bf16.mxu0 %v3880_v8  ;;  %v180_v3 = vld [vmem:[#allocation2 + $0x348] sm:$0xff]  ;;  %v3910_v8 = vld [vmem:[#allocation5 + $0x584] ss:$16 sps:$4 sm:$0xff]  }
  0x8d   :  { %2176 = vmatprep.subr.bf16.mxu1 %v3883_v9  ;;  %v3913_v9 = vld [vmem:[#allocation5 + $0x784] ss:$16 sps:$4 sm:$0xff]  }
  0x8e   :  { %1888 = vmatmul.mubr.bf16.gmra.mxu0 %v4366_v14  ;;  %v197_v55 = vld [vmem:[#allocation2 + $0x3d0] sm:$0xff] }
  0x8f   :  { %2001 = vmatmul.mubr.bf16.gmra.mxu1 %v4368_v15  ;;  %2064 = vmatpush1.bf16.msra.mxu0 %v3878_v10  ;;  %v3908_v10 = vld [vmem:[#allocation5 + $0x580] ss:$16 sps:$4 sm:$0xff]  }
  0x90   :  { %2177 = vmatpush1.bf16.msra.mxu1 %v3881_v11  ;;  %2065 = vmatprep.subr.bf16.mxu0 %v3886_v20  ;;  %v4394_v11 = vpack.c.bf16 %v180_v3, %v172_v0  ;;  %v173_v20 = vld [vmem:[#allocation2 + $0x310] sm:$0xff]  ;;  %v4416_v3 = vpack.c.bf16 %v197_v55, %v189_v52  ;;  %v3944_v52 = vld [vmem:[#allocation5 + $0xc8] ss:$16 sps:$4 sm:$0xff]  }
  0x91   :  { %2178 = vmatprep.subr.bf16.mxu1 %v3889_v21  ;;  %1897 = vmatprep.mubr.bf16.mxu0 %v4370_v25  ;;  %v181_v21 = vld [vmem:[#allocation2 + $0x350] sm:$0xff] }
  0x92   :  { %2010 = vmatprep.mubr.bf16.mxu1 %v4372_v26 }
  0x93   :  { %2066 = vmatpush1.bf16.msra.mxu0 %v3884_v22  ;;  %v3916_v22 = vld [vmem:[#allocation5 + $0x564] ss:$16 sps:$4 sm:$0xff]  }
  0x94   :  { %2179 = vmatpush1.bf16.msra.mxu1 %v3887_v27  ;;  %2067 = vmatprep.subr.bf16.mxu0 %v3892_v32  ;;  %v3919_v27 = vld [vmem:[#allocation5 + $0x764] ss:$16 sps:$4 sm:$0xff]   ;;  %v4402_v32 = vpack.c.bf16 %v179_v19, %v171_v18  ;;  %v4420_v18 = vpack.c.bf16 %v90_v7, %v82_v6  ;;  %v3935_v19 = vld [vmem:[#allocation5 + $0x700] ss:$16 sps:$4 sm:$0xff]   ;;  %v3952_v6 = vld [vmem:[#allocation5 + $0xac] ss:$16 sps:$4 sm:$0xff]  }
  0x95   :  { %2180 = vmatprep.subr.bf16.mxu1 %v3895_v33  ;;  %v4404_v33 = vpack.c.bf16 %v181_v21, %v173_v20  ;;  %v79_v20 = vld [vmem:[#allocation2 + $0x20] sm:$0xff]  ;;  %v3955_v7 = vld [vmem:[#allocation5 + $0x2ac] ss:$16 sps:$4 sm:$0xff]  }
  0x96   :  { %1898 = vmatmul.mubr.bf16.gmra.mxu0 %v4378_v40  ;;  %v87_v21 = vld [vmem:[#allocation2 + $0x60] sm:$0xff] }
  0x97   :  { %2011 = vmatmul.mubr.bf16.gmra.mxu1 %v4380_v41  ;;  %2068 = vmatpush2.bf16.msra.mxu0 %v3890_v34  ;;  %v190_v34 = vld [vmem:[#allocation2 + $0x398] sm:$0xff] }
  0x98   :  { %2181 = vmatpush2.bf16.msra.mxu1 %v3893_v35  ;;  %2069 = vmatprep.subr.bf16.mxu0 %v3898_v46  ;;  %v198_v35 = vld [vmem:[#allocation2 + $0x3d8] sm:$0xff] }
  0x99   :  { %2182 = vmatprep.subr.bf16.mxu1 %v3901_v47  ;;  %1907 = vmatprep.mubr.bf16.mxu0 %v4382_v49  ;;  %v4408_v46 = vpack.c.bf16 %v198_v35, %v190_v34  ;;  %v3923_v47 = vld [vmem:[#allocation5 + $0x740] ss:$16 sps:$4 sm:$0xff]   ;;  %v96_v34 = vld [vmem:[#allocation2 + $0xa8] sm:$0xff] }
  0x9a   :  { %2020 = vmatprep.mubr.bf16.mxu1 %v4384_v50  ;;  %v104_v35 = vld [vmem:[#allocation2 + $0xe8] sm:$0xff] }
  0x9b   :  { %2070 = vmatpush2.bf16.msra.mxu0 %v3896_v48  ;;  %v187_v48 = vld [vmem:[#allocation2 + $0x380] sm:$0xff]  ;;  %v4430_v55 = vpack.c.bf16 %v104_v35, %v96_v34  ;;  %v3959_v35 = vld [vmem:[#allocation5 + $0x288] ss:$16 sps:$4 sm:$0xff]  }
  0x9c   :  { %2183 = vmatpush2.bf16.msra.mxu1 %v3899_v51  ;;  %2071 = vmatprep.subr.bf16.mxu0 %v3904_v60  ;;  %v195_v51 = vld [vmem:[#allocation2 + $0x3c0] sm:$0xff] }
  0x9d   :  { %2184 = vmatprep.subr.bf16.mxu1 %v3907_v61  ;;  %v3926_v60 = vld [vmem:[#allocation5 + $0x520] ss:$16 sps:$4 sm:$0xff]   ;;  %v4414_v0 = vpack.c.bf16 %v195_v51, %v187_v48  ;;  %v3946_v48 = vld [vmem:[#allocation5 + $0xcc] ss:$16 sps:$4 sm:$0xff]  }
  0x9e   :  { %1908 = vmatmul.mubr.bf16.gmra.mxu0 %v4390_v4  ;;  %v3929_v61 = vld [vmem:[#allocation5 + $0x720] ss:$16 sps:$4 sm:$0xff]   ;;  %v3949_v51 = vld [vmem:[#allocation5 + $0x2cc] ss:$16 sps:$4 sm:$0xff]  }
  0x9f   :  { %2021 = vmatmul.mubr.bf16.gmra.mxu1 %v4392_v5  ;;  %2072 = vmatpush2.bf16.msra.mxu0 %v3902_v62  ;;  %v80_v62 = vld [vmem:[#allocation2 + $0x28] sm:$0xff] }
  0xa0   :  { %2185 = vmatpush2.bf16.msra.mxu1 %v3905_v63  ;;  %2073 = vmatprep.subr.bf16.mxu0 %v3910_v8  ;;  %v88_v63 = vld [vmem:[#allocation2 + $0x68] sm:$0xff]  ;;  %v3934_v8 = vld [vmem:[#allocation5 + $0x504] ss:$16 sps:$4 sm:$0xff]  }
  0xa1   :  { %2186 = vmatprep.subr.bf16.mxu1 %v3913_v9  ;;  %1917 = vmatprep.mubr.bf16.mxu0 %v4394_v11  ;;  %v3937_v9 = vld [vmem:[#allocation5 + $0x704] ss:$16 sps:$4 sm:$0xff]  }
  0xa2   :  { %2030 = vmatprep.mubr.bf16.mxu1 %v4396_v12 }
  0xa3   :  { %2074 = vmatpush2.bf16.msra.mxu0 %v3908_v10  ;;  %v3932_v10 = vld [vmem:[#allocation5 + $0x500] ss:$16 sps:$4 sm:$0xff]  }
  0xa4   :  { %2187 = vmatpush2.bf16.msra.mxu1 %v3911_v13  ;;  %2075 = vmatprep.subr.bf16.mxu0 %v3916_v22  ;;  %v4418_v13 = vpack.c.bf16 %v88_v63, %v80_v62  ;;  %v81_v22 = vld [vmem:[#allocation2 + $0x30] sm:$0xff] }
  0xa5   :  { %2188 = vmatprep.subr.bf16.mxu1 %v3919_v27  ;;  %v89_v27 = vld [vmem:[#allocation2 + $0x70] sm:$0xff] }
  0xa6   :  { %1918 = vmatmul.mubr.bf16.gmra.mxu0 %v4402_v32  ;;  %v97_v62 = vld [vmem:[#allocation2 + $0xb0] sm:$0xff] }
  0xa7   :  { %2031 = vmatmul.mubr.bf16.gmra.mxu1 %v4404_v33  ;;  %2076 = vmatpush2.bf16.msra.mxu0 %v3914_v28  ;;  %v3940_v28 = vld [vmem:[#allocation5 + $0xec] ss:$16 sps:$4 sm:$0xff]   ;;  %v105_v63 = vld [vmem:[#allocation2 + $0xf0] sm:$0xff] }
  0xa8   :  { %2189 = vmatpush2.bf16.msra.mxu1 %v3917_v29  ;;  %2077 = vmatprep.subr.bf16.mxu0 %v3922_v38  ;;  %v3943_v29 = vld [vmem:[#allocation5 + $0x2ec] ss:$16 sps:$4 sm:$0xff]   ;;  %v4426_v38 = vpack.c.bf16 %v87_v21, %v79_v20  ;;  %v4440_v21 = vpack.c.bf16 %v105_v63, %v97_v62 }
  0xa9   :  { %2190 = vmatprep.subr.bf16.mxu1 %v3925_v39  ;;  %1927 = vmatprep.mubr.bf16.mxu0 %v4406_v45  ;;  %v4428_v39 = vpack.c.bf16 %v89_v27, %v81_v22  ;;  %v114_v22 = vld [vmem:[#allocation2 + $0x138] sm:$0xff]  ;;  %v128_v62 = vld [vmem:[#allocation2 + $0x1a8] sm:$0xff] }
  0xaa   :  { %2040 = vmatprep.mubr.bf16.mxu1 %v4408_v46  ;;  %v122_v27 = vld [vmem:[#allocation2 + $0x178] sm:$0xff]  ;;  %v136_v63 = vld [vmem:[#allocation2 + $0x1e8] sm:$0xff] }
  0xab   :  { %2078 = vmatpush2.bf16.msra.mxu0 %v3920_v42  ;;  %v98_v42 = vld [vmem:[#allocation2 + $0xb8] sm:$0xff]  ;;  %v4444_v34 = vpack.c.bf16 %v122_v27, %v114_v22  ;;  %v4454_v27 = vpack.c.bf16 %v136_v63, %v128_v62  ;;  %v144_v62 = vld [vmem:[#allocation2 + $0x228] sm:$0xff] }
  0xac   :  { %2191 = vmatpush2.bf16.msra.mxu1 %v3923_v47  ;;  %2079 = vmatprep.subr.bf16.mxu0 %v3928_v56  ;;  %v106_v47 = vld [vmem:[#allocation2 + $0xf8] sm:$0xff]  ;;  %v152_v63 = vld [vmem:[#allocation2 + $0x268] sm:$0xff] }
  0xad   :  { %2192 = vmatprep.subr.bf16.mxu1 %v3931_v57  ;;  %v4432_v56 = vpack.c.bf16 %v106_v47, %v98_v42  ;;  %v3947_v57 = vld [vmem:[#allocation5 + $0x2c8] ss:$16 sps:$4 sm:$0xff]   ;;  %5005 = vst [vmem:[#allocation16_spill] sm:$0xff] %v4444_v34  ;;  %v111_v42 = vld [vmem:[#allocation2 + $0x120] sm:$0xff]  ;;  %5008 = vst [vmem:[#allocation19_spill] sm:$0xff] %v4454_v27 }
  0xae   :  { %1928 = vmatmul.mubr.bf16.gmra.mxu0 %v4414_v0  ;;  %v119_v47 = vld [vmem:[#allocation2 + $0x160] sm:$0xff]  ;;  %v3968_v22 = vld [vmem:[#allocation5 + $0x48] ss:$16 sps:$4 sm:$0xff]  }
  0xaf   :  { %2041 = vmatmul.mubr.bf16.gmra.mxu1 %v4416_v3  ;;  %2080 = vmatpush2.bf16.msra.mxu0 %v3926_v60  ;;  %v95_v60 = vld [vmem:[#allocation2 + $0xa0] sm:$0xff] }
  0xb0   :  { %2193 = vmatpush2.bf16.msra.mxu1 %v3929_v61  ;;  %2081 = vmatprep.subr.bf16.mxu0 %v3934_v8  ;;  %v103_v61 = vld [vmem:[#allocation2 + $0xe0] sm:$0xff]  ;;  %v3950_v8 = vld [vmem:[#allocation5 + $0xa8] ss:$16 sps:$4 sm:$0xff]  }
  0xb1   :  { %2194 = vmatprep.subr.bf16.mxu1 %v3937_v9  ;;  %2083 = vmatprep.mubr.bf16.mxu0 %v4418_v13  ;;  %v3953_v9 = vld [vmem:[#allocation5 + $0x2a8] ss:$16 sps:$4 sm:$0xff]   ;;  %v4438_v20 = vpack.c.bf16 %v103_v61, %v95_v60 }
  0xb2   :  { %2196 = vmatprep.mubr.bf16.mxu1 %v4420_v18  ;;  %v3962_v60 = vld [vmem:[#allocation5 + $0x68] ss:$16 sps:$4 sm:$0xff]  }
  0xb3   :  { %2082 = vmatpush2.bf16.msra.mxu0 %v3932_v10  ;;  %v112_v10 = vld [vmem:[#allocation2 + $0x128] sm:$0xff] }
  0xb4   :  { %2195 = vmatpush2.bf16.msra.mxu1 %v3935_v19  ;;  %2277 = vmatprep.subr.bf16.mxu0 %v3940_v28  ;;  %v120_v19 = vld [vmem:[#allocation2 + $0x168] sm:$0xff] }
  0xb5   :  { %2390 = vmatprep.subr.bf16.mxu1 %v3943_v29  ;;  %v3958_v28 = vld [vmem:[#allocation5 + $0x8c] ss:$16 sps:$4 sm:$0xff]   ;;  %v3965_v61 = vld [vmem:[#allocation5 + $0x268] ss:$16 sps:$4 sm:$0xff]  }
  0xb6   :  { %2084 = vmatmul.mubr.bf16.vlgmr.msra.gmra.mxu0 %v4426_v38  ;;  %v3961_v29 = vld [vmem:[#allocation5 + $0x28c] ss:$16 sps:$4 sm:$0xff]  }
  0xb7   :  { %2197 = vmatmul.mubr.bf16.vlgmr.msra.gmra.mxu1 %v4428_v39  ;;  %2278 = vmatpush1.bf16.msra.mxu0 %v3938_v30  ;;  %v3956_v30 = vld [vmem:[#allocation5 + $0x88] ss:$16 sps:$4 sm:$0xff]  }
  0xb8   :  { %2391 = vmatpush1.bf16.msra.mxu1 %v3941_v31  ;;  %2279 = vmatprep.subr.bf16.mxu0 %v3946_v48  ;;  %v4442_v31 = vpack.c.bf16 %v120_v19, %v112_v10  ;;  %v113_v48 = vld [vmem:[#allocation2 + $0x130] sm:$0xff]  ;;  %v3970_v10 = vld [vmem:[#allocation5 + $0x4c] ss:$16 sps:$4 sm:$0xff]  }
  0xb9   :  { %2392 = vmatprep.subr.bf16.mxu1 %v3949_v51  ;;  %2093 = vmatprep.mubr.bf16.mxu0 %v4430_v55  ;;  %v121_v51 = vld [vmem:[#allocation2 + $0x170] sm:$0xff]  ;;  %v3973_v19 = vld [vmem:[#allocation5 + $0x24c] ss:$16 sps:$4 sm:$0xff]  }
  0xba   :  { %2206 = vmatprep.mubr.bf16.mxu1 %v4432_v56  ;;  %5004 = vst [vmem:[#allocation15_spill] sm:$0xff] %v4442_v31 }
  0xbb   :  { %2280 = vmatpush1.bf16.msra.mxu0 %v3944_v52  ;;  %v3964_v52 = vld [vmem:[#allocation5 + $0x6c] ss:$16 sps:$4 sm:$0xff]  }
  0xbc   :  { %2393 = vmatpush1.bf16.msra.mxu1 %v3947_v57  ;;  %2281 = vmatprep.subr.bf16.mxu0 %v3952_v6  ;;  %v3967_v57 = vld [vmem:[#allocation5 + $0x26c] ss:$16 sps:$4 sm:$0xff]   ;;  %v4450_v6 = vpack.c.bf16 %v119_v47, %v111_v42  ;;  %v127_v42 = vld [vmem:[#allocation2 + $0x1a0] sm:$0xff] }
  0xbd   :  { %2394 = vmatprep.subr.bf16.mxu1 %v3955_v7  ;;  %v4452_v7 = vpack.c.bf16 %v121_v51, %v113_v48  ;;  %v135_v47 = vld [vmem:[#allocation2 + $0x1e0] sm:$0xff]  ;;  %v3976_v48 = vld [vmem:[#allocation5 + $0x2c] ss:$16 sps:$4 sm:$0xff]  }
  0xbe   :  { %2094 = vmatmul.mubr.bf16.gmra.mxu0 %v4438_v20  ;;  %5006 = vst [vmem:[#allocation17_spill] sm:$0xff] %v4450_v6  ;;  %v3979_v51 = vld [vmem:[#allocation5 + $0x22c] ss:$16 sps:$4 sm:$0xff]  }
  0xbf   :  { %2207 = vmatmul.mubr.bf16.gmra.mxu1 %v4440_v21  ;;  %2282 = vmatpush1.bf16.msra.mxu0 %v3950_v8  ;;  %5007 = vst [vmem:[#allocation18_spill] sm:$0xff] %v4452_v7  ;;  %v130_v8 = vld [vmem:[#allocation2 + $0x1b8] sm:$0xff] }
  0xc0   :  { %2395 = vmatpush1.bf16.msra.mxu1 %v3953_v9  ;;  %2283 = vmatprep.subr.bf16.mxu0 %v3958_v28  ;;  %v138_v9 = vld [vmem:[#allocation2 + $0x1f8] sm:$0xff] }
  0xc1   :  { %2396 = vmatprep.subr.bf16.mxu1 %v3961_v29  ;;  %2103 = vmatprep.mubr.bf16.mxu0 %v4442_v31  ;;  %v4456_v28 = vpack.c.bf16 %v138_v9, %v130_v8  ;;  %v3971_v29 = vld [vmem:[#allocation5 + $0x248] ss:$16 sps:$4 sm:$0xff]   ;;  %v4462_v8 = vpack.c.bf16 %v135_v47, %v127_v42  ;;  %v143_v47 = vld [vmem:[#allocation2 + $0x220] sm:$0xff] }
  0xc2   :  { %2216 = vmatprep.mubr.bf16.mxu1 %v4444_v34  ;;  %v3983_v42 = vld [vmem:[#allocation5 + $0x208] ss:$16 sps:$4 sm:$0xff]   ;;  %v175_v34 = vld [vmem:[#allocation2 + $0x320] sm:$0xff] }
  0xc3   :  { %2284 = vmatpush1.bf16.msra.mxu0 %v3956_v30  ;;  %5009 = vst [vmem:[#allocation20_spill] sm:$0xff] %v4456_v28  ;;  %v129_v30 = vld [vmem:[#allocation2 + $0x1b0] sm:$0xff]  ;;  %5010 = vst [vmem:[#allocation21_spill] sm:$0xff] %v4462_v8  ;;  %v183_v31 = vld [vmem:[#allocation2 + $0x360] sm:$0xff] }
  0xc4   :  { %2397 = vmatpush1.bf16.msra.mxu1 %v3959_v35  ;;  %2285 = vmatprep.subr.bf16.mxu0 %v3964_v52  ;;  %v137_v35 = vld [vmem:[#allocation2 + $0x1f0] sm:$0xff]  ;;  %v3974_v52 = vld [vmem:[#allocation5 + $0x28] ss:$16 sps:$4 sm:$0xff]  }
  0xc5   :  { %2398 = vmatprep.subr.bf16.mxu1 %v3967_v57  ;;  %v3977_v57 = vld [vmem:[#allocation5 + $0x228] ss:$16 sps:$4 sm:$0xff]   ;;  %v4464_v9 = vpack.c.bf16 %v137_v35, %v129_v30  ;;  %v151_v30 = vld [vmem:[#allocation2 + $0x260] sm:$0xff]  ;;  %v3988_v35 = vld [vmem:[#allocation5 + $0x1ec] ss:$16 sps:$4 sm:$0xff]  }
  0xc6   :  { %2104 = vmatmul.mubr.bf16.gmra.mxu0 %v4450_v6 }
  0xc7   :  { %2217 = vmatmul.mubr.bf16.gmra.mxu1 %v4452_v7  ;;  %2286 = vmatpush1.bf16.msra.mxu0 %v3962_v60  ;;  %5011 = vst [vmem:[#allocation22_spill] sm:$0xff] %v4464_v9  ;;  %v146_v60 = vld [vmem:[#allocation2 + $0x238] sm:$0xff] }
  0xc8   :  { %2399 = vmatpush1.bf16.msra.mxu1 %v3965_v61  ;;  %2287 = vmatprep.subr.bf16.mxu0 %v3970_v10  ;;  %v154_v61 = vld [vmem:[#allocation2 + $0x278] sm:$0xff] }
  0xc9   :  { %2400 = vmatprep.subr.bf16.mxu1 %v3973_v19  ;;  %2113 = vmatprep.mubr.bf16.mxu0 %v4454_v27  ;;  %v3982_v7 = vld [vmem:[#allocation5 + $0xc] ss:$16 sps:$4 sm:$0xff]   ;;  %v3980_v19 = vld [vmem:[#allocation5 + $0x8] ss:$16 sps:$4 sm:$0xff]   ;;  %v4466_v27 = vpack.c.bf16 %v152_v63, %v144_v62 }
  0xca   :  { %2226 = vmatprep.mubr.bf16.mxu1 %v4456_v28  ;;  %v3985_v10 = vld [vmem:[#allocation5 + $0x20c] ss:$16 sps:$4 sm:$0xff]   ;;  %v4468_v28 = vpack.c.bf16 %v154_v61, %v146_v60  ;;  %v3989_v62 = vld [vmem:[#allocation5 + $0x3e8] ss:$16 sps:$4 sm:$0xff]   ;;  %v4474_v61 = vpack.c.bf16 %v151_v30, %v143_v47  ;;  %v159_v30 = vld [vmem:[#allocation2 + $0x2a0] sm:$0xff] }
  0xcb   :  { %2288 = vmatpush1.bf16.msra.mxu0 %v3968_v22  ;;  %5012 = vst [vmem:[#allocation23_spill] sm:$0xff] %v4466_v27  ;;  %v145_v22 = vld [vmem:[#allocation2 + $0x230] sm:$0xff]  ;;  %v160_v63 = vld [vmem:[#allocation2 + $0x2a8] sm:$0xff] }
  0xcc   :  { %2401 = vmatpush1.bf16.msra.mxu1 %v3971_v29  ;;  %2289 = vmatprep.subr.bf16.mxu0 %v3976_v48  ;;  %5013 = vst [vmem:[#allocation24_spill] sm:$0xff] %v4468_v28  ;;  %v153_v29 = vld [vmem:[#allocation2 + $0x270] sm:$0xff]  ;;  %v3991_v48 = vld [vmem:[#allocation5 + $0x3ec] ss:$16 sps:$4 sm:$0xff]   ;;  %5014 = vst [vmem:[#allocation25_spill] sm:$0xff] %v4474_v61 }
  0xcd   :  { %2402 = vmatprep.subr.bf16.mxu1 %v3979_v51  ;;  %v3986_v51 = vld [vmem:[#allocation5 + $0x1e8] ss:$16 sps:$4 sm:$0xff]  }
  0xce   :  { %2114 = vmatmul.mubr.bf16.gmra.mxu0 %v4462_v8  ;;  %v168_v60 = vld [vmem:[#allocation2 + $0x2e8] sm:$0xff] }
  0xcf   :  { %2227 = vmatmul.mubr.bf16.gmra.mxu1 %v4464_v9  ;;  %2290 = vmatpush1.bf16.msra.mxu0 %v3974_v52  ;;  %v4476_v9 = vpack.c.bf16 %v153_v29, %v145_v22  ;;  %v162_v52 = vld [vmem:[#allocation2 + $0x2b8] sm:$0xff]  ;;  %v167_v22 = vld [vmem:[#allocation2 + $0x2e0] sm:$0xff] }
  0xd0   :  { %2403 = vmatpush1.bf16.msra.mxu1 %v3977_v57  ;;  %2291 = vmatprep.subr.bf16.mxu0 %v3982_v7  ;;  %v170_v57 = vld [vmem:[#allocation2 + $0x2f8] sm:$0xff] }
  0xd1   :  { %2404 = vmatprep.subr.bf16.mxu1 %v3985_v10  ;;  %2123 = vmatprep.mubr.bf16.mxu0 %v4466_v27  ;;  %5015 = vst [vmem:[#allocation26_spill] sm:$0xff] %v4476_v9  ;;  %v3994_v8 = vld [vmem:[#allocation5 + $0x1cc] ss:$16 sps:$4 sm:$0xff]   ;;  %v3992_v10 = vld [vmem:[#allocation5 + $0x1c8] ss:$16 sps:$4 sm:$0xff]   ;;  %v4478_v27 = vpack.c.bf16 %v168_v60, %v160_v63 }
  0xd2   :  { %2236 = vmatprep.mubr.bf16.mxu1 %v4468_v28  ;;  %v3997_v7 = vld [vmem:[#allocation5 + $0x3cc] ss:$16 sps:$4 sm:$0xff]   ;;  %v4480_v28 = vpack.c.bf16 %v170_v57, %v162_v52  ;;  %v3995_v47 = vld [vmem:[#allocation5 + $0x3c8] ss:$16 sps:$4 sm:$0xff]   ;;  %v4486_v57 = vpack.c.bf16 %v167_v22, %v159_v30  ;;  %v177_v30 = vld [vmem:[#allocation2 + $0x330] sm:$0xff] }
  0xd3   :  { %2292 = vmatpush1.bf16.msra.mxu0 %v3980_v19  ;;  %5016 = vst [vmem:[#allocation27_spill] sm:$0xff] %v4478_v27  ;;  %v161_v19 = vld [vmem:[#allocation2 + $0x2b0] sm:$0xff]  ;;  %v4000_v29 = vld [vmem:[#allocation5 + $0x1ac] ss:$16 sps:$4 sm:$0xff]   ;;  %v4001_v63 = vld [vmem:[#allocation5 + $0x3a8] ss:$16 sps:$4 sm:$0xff]  }
  0xd4   :  { %2405 = vmatpush1.bf16.msra.mxu1 %v3983_v42  ;;  %2293 = vmatprep.subr.bf16.mxu0 %v3988_v35  ;;  %5017 = vst [vmem:[#allocation28_spill] sm:$0xff] %v4480_v28  ;;  %v169_v42 = vld [vmem:[#allocation2 + $0x2f0] sm:$0xff]  ;;  %v4003_v35 = vld [vmem:[#allocation5 + $0x3ac] ss:$16 sps:$4 sm:$0xff]   ;;  %5018 = vst [vmem:[#allocation29_spill] sm:$0xff] %v4486_v57 }
  0xd5   :  { %2406 = vmatprep.subr.bf16.mxu1 %v3991_v48  ;;  %v3998_v48 = vld [vmem:[#allocation5 + $0x1a8] ss:$16 sps:$4 sm:$0xff]   ;;  %v185_v22 = vld [vmem:[#allocation2 + $0x370] sm:$0xff] }
  0xd6   :  { %2124 = vmatmul.mubr.bf16.gmra.mxu0 %v4474_v61  ;;  %v176_v60 = vld [vmem:[#allocation2 + $0x328] sm:$0xff] }
  0xd7   :  { %2237 = vmatmul.mubr.bf16.gmra.mxu1 %v4476_v9  ;;  %2294 = vmatpush2.bf16.msra.mxu0 %v3986_v51  ;;  %v184_v52 = vld [vmem:[#allocation2 + $0x368] sm:$0xff]  ;;  %v4488_v9 = vpack.c.bf16 %v169_v42, %v161_v19  ;;  %v178_v51 = vld [vmem:[#allocation2 + $0x338] sm:$0xff] }
  0xd8   :  { %2407 = vmatpush2.bf16.msra.mxu1 %v3989_v62  ;;  %2295 = vmatprep.subr.bf16.mxu0 %v3994_v8  ;;  %v186_v62 = vld [vmem:[#allocation2 + $0x378] sm:$0xff]  ;;  %v4490_v6 = vpack.c.bf16 %v184_v52, %v176_v60  ;;  %v4498_v60 = vpack.c.bf16 %v183_v31, %v175_v34  ;;  %v4500_v52 = vpack.c.bf16 %v185_v22, %v177_v30  ;;  %v193_v31 = vld [vmem:[#allocation2 + $0x3b0] sm:$0xff] }
  0xd9   :  { %2408 = vmatprep.subr.bf16.mxu1 %v3997_v7  ;;  %2133 = vmatprep.mubr.bf16.mxu0 %v4478_v27  ;;  %5019 = vst [vmem:[#allocation30_spill] sm:$0xff] %v4488_v9  ;;  %v4006_v61 = vld [vmem:[#allocation5 + $0x18c] ss:$16 sps:$4 sm:$0xff]   ;;  %v4004_v7 = vld [vmem:[#allocation5 + $0x188] ss:$16 sps:$4 sm:$0xff]   ;;  %v201_v34 = vld [vmem:[#allocation2 + $0x3f0] sm:$0xff] }
  0xda   :  { %2246 = vmatprep.mubr.bf16.mxu1 %v4480_v28  ;;  %v4009_v8 = vld [vmem:[#allocation5 + $0x38c] ss:$16 sps:$4 sm:$0xff]   ;;  %v4007_v27 = vld [vmem:[#allocation5 + $0x388] ss:$16 sps:$4 sm:$0xff]   ;;  %5020 = vst [vmem:[#allocation31_spill] sm:$0xff] %v4490_v6  ;;  %v4492_v28 = vpack.c.bf16 %v186_v62, %v178_v51  ;;  %v4512_v22 = vpack.c.bf16 %v201_v34, %v193_v31 }
  0xdb   :  { %2296 = vmatpush2.bf16.msra.mxu0 %v3992_v10  ;;  %v4012_v10 = vld [vmem:[#allocation5 + $0x16c] ss:$16 sps:$4 sm:$0xff]   ;;  %v4010_v19 = vld [vmem:[#allocation5 + $0x168] ss:$16 sps:$4 sm:$0xff]  }
  0xdc   :  { %2409 = vmatpush2.bf16.msra.mxu1 %v3995_v47  ;;  %2297 = vmatprep.subr.bf16.mxu0 %v4000_v29  ;;  %5021 = vst [vmem:[#allocation32_spill] sm:$0xff] %v4492_v28  ;;  %v4015_v47 = vld [vmem:[#allocation5 + $0x36c] ss:$16 sps:$4 sm:$0xff]   ;;  %v4013_v42 = vld [vmem:[#allocation5 + $0x368] ss:$16 sps:$4 sm:$0xff]  }
  0xdd   :  { %2410 = vmatprep.subr.bf16.mxu1 %v4003_v35  ;;  %v192_v29 = vld [vmem:[#allocation2 + $0x3a8] sm:$0xff]  ;;  %v194_v51 = vld [vmem:[#allocation2 + $0x3b8] sm:$0xff] }
  0xde   :  { %2134 = vmatmul.mubr.bf16.gmra.mxu0 %v4486_v57  ;;  %v200_v35 = vld [vmem:[#allocation2 + $0x3e8] sm:$0xff]  ;;  %v202_v62 = vld [vmem:[#allocation2 + $0x3f8] sm:$0xff]  ;;  %v199_v57 = vld [vmem:[#allocation2 + $0x3e0] sm:$0xff] }
  0xdf   :  { %2247 = vmatmul.mubr.bf16.gmra.mxu1 %v4488_v9  ;;  %2298 = vmatpush2.bf16.msra.mxu0 %v3998_v48  ;;  %v4018_v48 = vld [vmem:[#allocation5 + $0x14c] ss:$16 sps:$4 sm:$0xff]   ;;  %v191_v9 = vld [vmem:[#allocation2 + $0x3a0] sm:$0xff]  ;;  %v4049_v34 = vld [vmem:[#allocation5 + $0x6a8] ss:$16 sps:$4 sm:$0xff]  }
  0xe0   :  { %2411 = vmatpush2.bf16.msra.mxu1 %v4001_v63  ;;  %2299 = vmatprep.subr.bf16.mxu0 %v4006_v61  ;;  %v4021_v61 = vld [vmem:[#allocation5 + $0x34c] ss:$16 sps:$4 sm:$0xff]   ;;  %v4016_v63 = vld [vmem:[#allocation5 + $0x148] ss:$16 sps:$4 sm:$0xff]   ;;  %v4510_v30 = vpack.c.bf16 %v199_v57, %v191_v9 }
  0xe1   :  { %2412 = vmatprep.subr.bf16.mxu1 %v4009_v8  ;;  %2143 = vmatprep.mubr.bf16.mxu0 %v4490_v6  ;;  %v4019_v8 = vld [vmem:[#allocation5 + $0x348] ss:$16 sps:$4 sm:$0xff]   ;;  %v4502_v6 = vpack.c.bf16 %v200_v35, %v192_v29  ;;  %v4030_v29 = vld [vmem:[#allocation5 + $0x10c] ss:$16 sps:$4 sm:$0xff]  }
  0xe2   :  { %2256 = vmatprep.mubr.bf16.mxu1 %v4492_v28  ;;  %v4504_v28 = vpack.c.bf16 %v202_v62, %v194_v51  ;;  %v4031_v35 = vld [vmem:[#allocation5 + $0x308] ss:$16 sps:$4 sm:$0xff]   ;;  %v4036_v9 = vld [vmem:[#allocation5 + $0x4ec] ss:$16 sps:$4 sm:$0xff]  }
  0xe3   :  { %2300 = vmatpush2.bf16.msra.mxu0 %v4004_v7  ;;  %v4027_v7 = vld [vmem:[#allocation5 + $0x32c] ss:$16 sps:$4 sm:$0xff]   ;;  %v4034_v51 = vld [vmem:[#allocation5 + $0x4e8] ss:$16 sps:$4 sm:$0xff]  }
  0xe4   :  { %2413 = vmatpush2.bf16.msra.mxu1 %v4007_v27  ;;  %2301 = vmatprep.subr.bf16.mxu0 %v4012_v10  ;;  %v4024_v27 = vld [vmem:[#allocation5 + $0x12c] ss:$16 sps:$4 sm:$0xff]   ;;  %v4022_v10 = vld [vmem:[#allocation5 + $0x128] ss:$16 sps:$4 sm:$0xff]  }
  0xe5   :  { %2414 = vmatprep.subr.bf16.mxu1 %v4015_v47  ;;  %v4025_v47 = vld [vmem:[#allocation5 + $0x328] ss:$16 sps:$4 sm:$0xff]   ;;  %v4039_v57 = vld [vmem:[#allocation5 + $0x6ec] ss:$16 sps:$4 sm:$0xff]  }
  0xe6   :  { %2144 = vmatmul.mubr.bf16.gmra.mxu0 %v4498_v60  ;;  %v4037_v62 = vld [vmem:[#allocation5 + $0x6e8] ss:$16 sps:$4 sm:$0xff]   ;;  %v4048_v31 = vld [vmem:[#allocation5 + $0x4ac] ss:$16 sps:$4 sm:$0xff]  }
  0xe7   :  { %2257 = vmatmul.mubr.bf16.gmra.mxu1 %v4500_v52  ;;  %2302 = vmatpush2.bf16.msra.mxu0 %v4010_v19  ;;  %v4033_v19 = vld [vmem:[#allocation5 + $0x30c] ss:$16 sps:$4 sm:$0xff]  }
  0xe8   :  { %2415 = vmatpush2.bf16.msra.mxu1 %v4013_v42  ;;  %2303 = vmatprep.subr.bf16.mxu0 %v4018_v48  ;;  %v4028_v42 = vld [vmem:[#allocation5 + $0x108] ss:$16 sps:$4 sm:$0xff]   ;;  %v4042_v48 = vld [vmem:[#allocation5 + $0x4cc] ss:$16 sps:$4 sm:$0xff]  }
  0xe9   :  { %2416 = vmatprep.subr.bf16.mxu1 %v4021_v61  ;;  %2153 = vmatprep.mubr.bf16.mxu0 %v4502_v6  ;;  %v4045_v61 = vld [vmem:[#allocation5 + $0x6cc] ss:$16 sps:$4 sm:$0xff]  }
  0xea   :  { %2266 = vmatprep.mubr.bf16.mxu1 %v4504_v28 }
  0xeb   :  { %2304 = vmatpush2.bf16.msra.mxu0 %v4016_v63  ;;  %v4040_v63 = vld [vmem:[#allocation5 + $0x4c8] ss:$16 sps:$4 sm:$0xff]  }
  0xec   :  { %2417 = vmatpush2.bf16.msra.mxu1 %v4019_v8  ;;  %2305 = vmatprep.subr.bf16.mxu0 %v4024_v27  ;;  %v4043_v8 = vld [vmem:[#allocation5 + $0x6c8] ss:$16 sps:$4 sm:$0xff]   ;;  %v4054_v27 = vld [vmem:[#allocation5 + $0x48c] ss:$16 sps:$4 sm:$0xff]  }
  0xed   :  { %2418 = vmatprep.subr.bf16.mxu1 %v4027_v7  ;;  %v4055_v7 = vld [vmem:[#allocation5 + $0x688] ss:$16 sps:$4 sm:$0xff]  }
  0xee   :  { %2154 = vmatmul.mubr.bf16.gmra.mxu0 %v4510_v30 }
  0xef   :  { %2267 = vmatmul.mubr.bf16.gmra.mxu1 %v4512_v22  ;;  %2306 = vmatpush2.bf16.msra.mxu0 %v4022_v10  ;;  %v4060_v10 = vld [vmem:[#allocation5 + $0x46c] ss:$16 sps:$4 sm:$0xff]  }
  0xf0   :  { %2419 = vmatpush2.bf16.msra.mxu1 %v4025_v47  ;;  %2307 = vmatprep.subr.bf16.mxu0 %v4030_v29  ;;  %v4061_v47 = vld [vmem:[#allocation5 + $0x668] ss:$16 sps:$4 sm:$0xff]   ;;  %v4066_v29 = vld [vmem:[#allocation5 + $0x44c] ss:$16 sps:$4 sm:$0xff]  }
  0xf1   :  { %2420 = vmatprep.subr.bf16.mxu1 %v4033_v19  ;;  %2309 = vmatprep.mubr.bf16.mxu0 %v4324_v53  ;;  %v4051_v53 = vld [vmem:[#allocation5 + $0x6ac] ss:$16 sps:$4 sm:$0xff]   ;;  %v4067_v19 = vld [vmem:[#allocation5 + $0x648] ss:$16 sps:$4 sm:$0xff]  }
  0xf2   :  { %2422 = vmatprep.mubr.bf16.mxu1 %v4326_v54  ;;  %v4046_v54 = vld [vmem:[#allocation5 + $0x4a8] ss:$16 sps:$4 sm:$0xff]  }
  0xf3   :  { %2308 = vmatpush2.bf16.msra.mxu0 %v4028_v42  ;;  %v4070_v42 = vld [vmem:[#allocation5 + $0x428] ss:$16 sps:$4 sm:$0xff]  }
  0xf4   :  { %2421 = vmatpush2.bf16.msra.mxu1 %v4031_v35  ;;  %2503 = vmatprep.subr.bf16.mxu0 %v4036_v9  ;;  %v4073_v35 = vld [vmem:[#allocation5 + $0x628] ss:$16 sps:$4 sm:$0xff]   ;;  %v4078_v9 = vld [vmem:[#allocation5 + $0x40c] ss:$16 sps:$4 sm:$0xff]  }
  0xf5   :  { %2616 = vmatprep.subr.bf16.mxu1 %v4039_v57  ;;  %v4079_v57 = vld [vmem:[#allocation5 + $0x608] ss:$16 sps:$4 sm:$0xff]  }
  0xf6   :  { %2310 = vmatmul.mubr.bf16.vlgmr.msra.gmra.mxu0 %v4330_v16  ;;  %v4057_v16 = vld [vmem:[#allocation5 + $0x68c] ss:$16 sps:$4 sm:$0xff]  }
  0xf7   :  { %2423 = vmatmul.mubr.bf16.vlgmr.msra.gmra.mxu1 %v4332_v17  ;;  %2504 = vmatpush1.bf16.msra.mxu0 %v4034_v51  ;;  %v4052_v17 = vld [vmem:[#allocation5 + $0x488] ss:$16 sps:$4 sm:$0xff]   ;;  %v4084_v51 = vld [vmem:[#allocation5 + $0x5ec] ss:$16 sps:$4 sm:$0xff]  }
  0xf8   :  { %2617 = vmatpush1.bf16.msra.mxu1 %v4037_v62  ;;  %2505 = vmatprep.subr.bf16.mxu0 %v4042_v48  ;;  %v4085_v62 = vld [vmem:[#allocation5 + $0x7e8] ss:$16 sps:$4 sm:$0xff]   ;;  %v4090_v48 = vld [vmem:[#allocation5 + $0x5cc] ss:$16 sps:$4 sm:$0xff]  }
  0xf9   :  { %2618 = vmatprep.subr.bf16.mxu1 %v4045_v61  ;;  %2319 = vmatprep.mubr.bf16.mxu0 %v4334_v23  ;;  %v4063_v23 = vld [vmem:[#allocation5 + $0x66c] ss:$16 sps:$4 sm:$0xff]   ;;  %v4091_v61 = vld [vmem:[#allocation5 + $0x7c8] ss:$16 sps:$4 sm:$0xff]  }
  0xfa   :  { %2432 = vmatprep.mubr.bf16.mxu1 %v4336_v24  ;;  %v4058_v24 = vld [vmem:[#allocation5 + $0x468] ss:$16 sps:$4 sm:$0xff]  }
  0xfb   :  { %2506 = vmatpush1.bf16.msra.mxu0 %v4040_v63  ;;  %v4096_v63 = vld [vmem:[#allocation5 + $0x5ac] ss:$16 sps:$4 sm:$0xff]  }
  0xfc   :  { %2619 = vmatpush1.bf16.msra.mxu1 %v4043_v8  ;;  %2507 = vmatprep.subr.bf16.mxu0 %v4048_v31  ;;  %v4097_v8 = vld [vmem:[#allocation5 + $0x7a8] ss:$16 sps:$4 sm:$0xff]   ;;  %v4102_v31 = vld [vmem:[#allocation5 + $0x58c] ss:$16 sps:$4 sm:$0xff]  }
  0xfd   :  { %2620 = vmatprep.subr.bf16.mxu1 %v4051_v53  ;;  %v4105_v53 = vld [vmem:[#allocation5 + $0x78c] ss:$16 sps:$4 sm:$0xff]  }
  0xfe   :  { %2320 = vmatmul.mubr.bf16.gmra.mxu0 %v4342_v36  ;;  %v4069_v36 = vld [vmem:[#allocation5 + $0x64c] ss:$16 sps:$4 sm:$0xff]  }
  0xff   :  { %2433 = vmatmul.mubr.bf16.gmra.mxu1 %v4344_v37  ;;  %2508 = vmatpush1.bf16.msra.mxu0 %v4046_v54  ;;  %v4064_v37 = vld [vmem:[#allocation5 + $0x448] ss:$16 sps:$4 sm:$0xff]   ;;  %v4108_v54 = vld [vmem:[#allocation5 + $0x56c] ss:$16 sps:$4 sm:$0xff]  }
 0x100   :  { %2621 = vmatpush1.bf16.msra.mxu1 %v4049_v34  ;;  %2509 = vmatprep.subr.bf16.mxu0 %v4054_v27  ;;  %v4111_v34 = vld [vmem:[#allocation5 + $0x76c] ss:$16 sps:$4 sm:$0xff]  }
 0x101   :  { %2622 = vmatprep.subr.bf16.mxu1 %v4057_v16  ;;  %2329 = vmatprep.mubr.bf16.mxu0 %v4346_v43  ;;  %v4072_v43 = vld [vmem:[#allocation5 + $0x42c] ss:$16 sps:$4 sm:$0xff]   ;;  %v4115_v16 = vld [vmem:[#allocation5 + $0x748] ss:$16 sps:$4 sm:$0xff]  }
 0x102   :  { %2442 = vmatprep.mubr.bf16.mxu1 %v4348_v44  ;;  %v4075_v44 = vld [vmem:[#allocation5 + $0x62c] ss:$16 sps:$4 sm:$0xff]  }
 0x103   :  { %2510 = vmatpush1.bf16.msra.mxu0 %v4052_v17  ;;  %v4114_v27 = vld [vmem:[#allocation5 + $0x54c] ss:$16 sps:$4 sm:$0xff]   ;;  %v525_v17 = vlaneseq }
 0x104   :  { %2623 = vmatpush1.bf16.msra.mxu1 %v4055_v7  ;;  %2511 = vmatprep.subr.bf16.mxu0 %v4060_v10  ;;  %v4118_v7 = vld [vmem:[#allocation5 + $0x528] ss:$16 sps:$4 sm:$0xff]  }
 0x105   :  { %2624 = vmatprep.subr.bf16.mxu1 %v4063_v23  ;;  %v4121_v10 = vld [vmem:[#allocation5 + $0x728] ss:$16 sps:$4 sm:$0xff]   ;;  %v4129_v23 = vld [vmem:[#allocation5 + $0x70c] ss:$16 sps:$4 sm:$0xff]  }
 0x106   :  { %2330 = vmatmul.mubr.bf16.gmra.mxu0 %v4354_v58  ;;  %v4081_v58 = vld [vmem:[#allocation5 + $0x60c] ss:$16 sps:$4 sm:$0xff]  }
 0x107   :  { %2443 = vmatmul.mubr.bf16.gmra.mxu1 %v4356_v59  ;;  %2512 = vmatpush1.bf16.msra.mxu0 %v4058_v24  ;;  %v4076_v59 = vld [vmem:[#allocation5 + $0x408] ss:$16 sps:$4 sm:$0xff]  }
 0x108   :  { %2625 = vmatpush1.bf16.msra.mxu1 %v4061_v47  ;;  %2513 = vmatprep.subr.bf16.mxu0 %v4066_v29  ;;  %v4124_v24 = vld [vmem:[#allocation5 + $0x508] ss:$16 sps:$4 sm:$0xff]   ;;  %v4551_v47 = vld [vmem:[#allocation7] sm:$0xf] }
 0x109   :  { %2626 = vmatprep.subr.bf16.mxu1 %v4069_v36  ;;  %2339 = vmatprep.mubr.bf16.mxu0 %v4358_v1  ;;  %v4087_v1 = vld [vmem:[#allocation5 + $0x7ec] ss:$16 sps:$4 sm:$0xff]   ;;  %5023 = vst [vmem:[#allocation34_spill] sm:$0xff] %v4551_v47 }
 0x10a   :  { %2452 = vmatprep.mubr.bf16.mxu1 %v4360_v2  ;;  %v4082_v2 = vld [vmem:[#allocation5 + $0x5e8] ss:$16 sps:$4 sm:$0xff]   ;;  %v4130_v29 = vld [vmem:[#allocation8 + $0x78] sm:$0xff]  }
 0x10b   :  { %2514 = vmatpush1.bf16.msra.mxu0 %v4064_v37 }
 0x10c   :  { %2627 = vmatpush1.bf16.msra.mxu1 %v4067_v19  ;;  %2515 = vmatprep.subr.bf16.mxu0 %v4072_v43  ;;  %v4132_v19 = vld [vmem:[#allocation8 + $0x70] sm:$0xff]  }
 0x10d   :  { %2628 = vmatprep.subr.bf16.mxu1 %v4075_v44 }
 0x10e   :  { %2340 = vmatmul.mubr.bf16.gmra.mxu0 %v4366_v14  ;;  %v4093_v14 = vld [vmem:[#allocation5 + $0x7cc] ss:$16 sps:$4 sm:$0xff]  }
 0x10f   :  { %2453 = vmatmul.mubr.bf16.gmra.mxu1 %v4368_v15  ;;  %2516 = vmatpush1.bf16.msra.mxu0 %v4070_v42  ;;  %v4088_v15 = vld [vmem:[#allocation5 + $0x5c8] ss:$16 sps:$4 sm:$0xff]  }
 0x110   :  { %2629 = vmatpush1.bf16.msra.mxu1 %v4073_v35  ;;  %2517 = vmatprep.subr.bf16.mxu0 %v4078_v9  ;;  %v4133_v35 = vld [vmem:[#allocation8 + $0x30] sm:$0xff]  }
 0x111   :  { %2630 = vmatprep.subr.bf16.mxu1 %v4081_v58  ;;  %2349 = vmatprep.mubr.bf16.mxu0 %v4370_v25  ;;  %v4099_v25 = vld [vmem:[#allocation5 + $0x7ac] ss:$16 sps:$4 sm:$0xff]  }
 0x112   :  { %2462 = vmatprep.mubr.bf16.mxu1 %v4372_v26  ;;  %v4094_v26 = vld [vmem:[#allocation5 + $0x5a8] ss:$16 sps:$4 sm:$0xff]  }
 0x113   :  { %2518 = vmatpush1.bf16.msra.mxu0 %v4076_v59  ;;  %v4134_v59 = vld [vmem:[#allocation8 + $0x68] sm:$0xff]  }
 0x114   :  { %2631 = vmatpush1.bf16.msra.mxu1 %v4079_v57  ;;  %2519 = vmatprep.subr.bf16.mxu0 %v4084_v51 }
 0x115   :  { %2632 = vmatprep.subr.bf16.mxu1 %v4087_v1  ;;  %v4136_v1 = vld [vmem:[#allocation8 + $0x60] sm:$0xff]  }
 0x116   :  { %2350 = vmatmul.mubr.bf16.gmra.mxu0 %v4378_v40  ;;  %v4100_v40 = vld [vmem:[#allocation5 + $0x588] ss:$16 sps:$4 sm:$0xff]  }
 0x117   :  { %2463 = vmatmul.mubr.bf16.gmra.mxu1 %v4380_v41  ;;  %2520 = vmatpush2.bf16.msra.mxu0 %v4082_v2  ;;  %v4103_v41 = vld [vmem:[#allocation5 + $0x788] ss:$16 sps:$4 sm:$0xff]  }
 0x118   :  { %2633 = vmatpush2.bf16.msra.mxu1 %v4085_v62  ;;  %2521 = vmatprep.subr.bf16.mxu0 %v4090_v48 }
 0x119   :  { %2634 = vmatprep.subr.bf16.mxu1 %v4093_v14  ;;  %2359 = vmatprep.mubr.bf16.mxu0 %v4382_v49  ;;  %v4106_v49 = vld [vmem:[#allocation5 + $0x568] ss:$16 sps:$4 sm:$0xff]  }
 0x11a   :  { %2472 = vmatprep.mubr.bf16.mxu1 %v4384_v50  ;;  %v4109_v50 = vld [vmem:[#allocation5 + $0x768] ss:$16 sps:$4 sm:$0xff]  }
 0x11b   :  { %2522 = vmatpush2.bf16.msra.mxu0 %v4088_v15  ;;  %v5024_v14 = vld [vmem:[#allocation15_spill] sm:$0xff]  ;;  %v5025_v15 = vld [vmem:[#allocation16_spill] sm:$0xff] }
 0x11c   :  { %2635 = vmatpush2.bf16.msra.mxu1 %v4091_v61  ;;  %2523 = vmatprep.subr.bf16.mxu0 %v4096_v63 }
 0x11d   :  { %2636 = vmatprep.subr.bf16.mxu1 %v4099_v25  ;;  %v4137_v25 = vld [vmem:[#allocation8 + $0x20] sm:$0xff]  }
 0x11e   :  { %2360 = vmatmul.mubr.bf16.gmra.mxu0 %v4390_v4  ;;  %v4117_v4 = vld [vmem:[#allocation5 + $0x74c] ss:$16 sps:$4 sm:$0xff]  }
 0x11f   :  { %2473 = vmatmul.mubr.bf16.gmra.mxu1 %v4392_v5  ;;  %2524 = vmatpush2.bf16.msra.mxu0 %v4094_v26  ;;  %v4112_v5 = vld [vmem:[#allocation5 + $0x548] ss:$16 sps:$4 sm:$0xff]  }
 0x120   :  { %2637 = vmatpush2.bf16.msra.mxu1 %v4097_v8  ;;  %2525 = vmatprep.subr.bf16.mxu0 %v4102_v31  ;;  %v4138_v31 = vld [vmem:[#allocation8 + $0x58] sm:$0xff]  }
 0x121   :  { %2638 = vmatprep.subr.bf16.mxu1 %v4105_v53  ;;  %2369 = vmatprep.mubr.bf16.mxu0 %v4394_v11  ;;  %v4120_v11 = vld [vmem:[#allocation5 + $0x52c] ss:$16 sps:$4 sm:$0xff]  }
 0x122   :  { %2482 = vmatprep.mubr.bf16.mxu1 %v4396_v12  ;;  %v4123_v12 = vld [vmem:[#allocation5 + $0x72c] ss:$16 sps:$4 sm:$0xff]  }
 0x123   :  { %2526 = vmatpush2.bf16.msra.mxu0 %v4100_v40 }
 0x124   :  { %2639 = vmatpush2.bf16.msra.mxu1 %v4103_v41  ;;  %2527 = vmatprep.subr.bf16.mxu0 %v4108_v54  ;;  %v4139_v54 = vld [vmem:[#allocation8 + $0x18] sm:$0xff]  }
 0x125   :  { %2640 = vmatprep.subr.bf16.mxu1 %v4111_v34  ;;  %v4140_v34 = vld [vmem:[#allocation8 + $0x50] sm:$0xff]  }
 0x126   :  { %2370 = vmatmul.mubr.bf16.gmra.mxu0 %v4402_v32  ;;  %v4546_v32 = vshrl.u32 %v525_v17, 7  ;;  %v5029_v17 = vld [vmem:[#allocation20_spill] sm:$0xff] }
 0x127   :  { %2483 = vmatmul.mubr.bf16.gmra.mxu1 %v4404_v33  ;;  %2528 = vmatpush2.bf16.msra.mxu0 %v4106_v49  ;;  %v4126_v33 = vld [vmem:[#allocation5 + $0x50c] ss:$16 sps:$4 sm:$0xff]  }
 0x128   :  { %2641 = vmatpush2.bf16.msra.mxu1 %v4109_v50  ;;  %2529 = vmatprep.subr.bf16.mxu0 %v4114_v27  ;;  %5022 = vst [vmem:[#allocation33_spill] sm:$0xff] %v4546_v32  ;;  %v531_v36 = vsub.s32 1, %v4546_v32  ;;  %v5026_v27 = vld [vmem:[#allocation17_spill] sm:$0xff] }
 0x129   :  { %2642 = vmatprep.subr.bf16.mxu1 %v4117_v4  ;;  %2379 = vmatprep.mubr.bf16.mxu0 %v4406_v45  ;;  %v4127_v45 = vld [vmem:[#allocation5 + $0x708] ss:$16 sps:$4 sm:$0xff]   ;;  %v5027_v4 = vld [vmem:[#allocation18_spill] sm:$0xff] }
 0x12a   :  { %2492 = vmatprep.mubr.bf16.mxu1 %v4408_v46  ;;  %v527_v46 = vsub.s32 0, %v4546_v32  ;;  %v4560_v37 = vrot.slane %v4551_v47, %v531_v36 }
 0x12b   :  { %2530 = vmatpush2.bf16.msra.mxu0 %v4112_v5 }
 0x12c   :  { %2643 = vmatpush2.bf16.msra.mxu1 %v4115_v16  ;;  %2531 = vmatprep.subr.bf16.mxu0 %v4120_v11  ;;  %v5028_v16 = vld [vmem:[#allocation19_spill] sm:$0xff] }
 0x12d   :  { %2644 = vmatprep.subr.bf16.mxu1 %v4123_v12 }
 0x12e   :  { %2380 = vmatmul.mubr.bf16.gmra.mxu0 %v4414_v0  ;;  %v4557_v0 = vrot.slane %v4551_v47, %v527_v46 }
 0x12f   :  { %2493 = vmatmul.mubr.bf16.gmra.mxu1 %v4416_v3  ;;  %2532 = vmatpush2.bf16.msra.mxu0 %v4118_v7  ;;  %v4131_v3 = vld [vmem:[#allocation8 + $0x38] sm:$0xff]   ;;  %v4141_v7 = vld [vmem:[#allocation8 + $0x10] sm:$0xff]  }
 0x130   :  { %2645 = vmatpush2.bf16.msra.mxu1 %v4121_v10  ;;  %2533 = vmatprep.subr.bf16.mxu0 %v4126_v33 }
 0x131   :  { %2646 = vmatprep.subr.bf16.mxu1 %v4129_v23  ;;  %2535 = vmatprep.mubr.bf16.mxu0 %v4418_v13  ;;  %v4142_v23 = vld [vmem:[#allocation8 + $0x48] sm:$0xff]  }
 0x132   :  { %2648 = vmatprep.mubr.bf16.mxu1 %v4420_v18 }
 0x133   :  { %2534 = vmatpush2.bf16.msra.mxu0 %v4124_v24  ;;  %v4146_v24 = vld [vmem:[#allocation8 + $0xf8] sm:$0xff]  }
 0x134   :  { %2647 = vmatpush2.bf16.msra.mxu1 %v4127_v45  ;;  %3606 = vmatprep.subr.bf16.mxu0 %v4130_v29  ;;  %v4147_v45 = vld [vmem:[#allocation8 + $0xb8] sm:$0xff]  }
 0x135   :  { %3670 = vmatprep.subr.bf16.mxu1 %v4146_v24 }
 0x136   :  { %v1859_v43 = vpop.f32.mrf.mxu0  ;;  %2536 = vmatmul.mubr.bf16.vlgmr.msra.gmra.mxu0 %v4426_v38 }
 0x137   :  { %v1972_v44 = vpop.f32.mrf.mxu1  ;;  %2649 = vmatmul.mubr.bf16.vlgmr.msra.gmra.mxu1 %v4428_v39  ;;  %v1860_v13 = vadd.f32 %v1859_v43, %v4557_v0  ;;  %2545 = vmatprep.mubr.bf16.mxu0 %v4430_v55  ;;  %v4143_v43 = vld [vmem:[#allocation8 + $0x8] sm:$0xff]  }
 0x138   :  { %2658 = vmatprep.mubr.bf16.mxu1 %v4432_v56  ;;  %v1861_v18 = vpop.f32.mrf.mxu0  ;;  %3607 = vmatpush3.bf16.msra.mxu0 %v4131_v3  ;;  %v4135_v56 = vld [vmem:[#allocation8 + $0x28] sm:$0xff]  }
 0x139   :  { %v1974_v42 = vpop.f32.mrf.mxu1  ;;  %v4567_v9 = vadd.f32 %v1972_v44, %v1860_v13  ;;  %v1862_v58 = vadd.f32 %v1861_v18, %v4560_v37  ;;  %3608 = vmatprep.subr.bf16.mxu0 %v4132_v19  ;;  %3671 = vmatpush3.bf16.msra.mxu1 %v4147_v45  ;;  %v4144_v44 = vld [vmem:[#allocation8 + $0x40] sm:$0xff]  }
 0x13a   :  { %v4570_v57 = vpop.f32.mrf.mxu0 }
 0x13b   :  { %v4572_v38 = vpop.f32.mrf.mxu1  ;;  %v4574_v39 = vadd.f32 %v1974_v42, %v1862_v58  ;;  %v5030_v42 = vld [vmem:[#allocation21_spill] sm:$0xff] }
 0x13c   :  { %v4576_v51 = vpop.f32.mrf.mxu0  ;;  %3609 = vmatpush3.bf16.msra.mxu0 %v4133_v35  ;;  %v5031_v35 = vld [vmem:[#allocation22_spill] sm:$0xff] }
 0x13d   :  { %v4578_v55 = vpop.f32.mrf.mxu1  ;;  %3610 = vmatprep.subr.bf16.mxu0 %v4134_v59  ;;  %v5032_v59 = vld [vmem:[#allocation23_spill] sm:$0xff] }
 0x13e   :  { %v1869_v2 = vpop.f32.mrf.mxu0  ;;  %2546 = vmatmul.mubr.bf16.gmra.mxu0 %v4438_v20 }
 0x13f   :  { %v1982_v62 = vpop.f32.mrf.mxu1  ;;  %2659 = vmatmul.mubr.bf16.gmra.mxu1 %v4440_v21  ;;  %v1870_v48 = vadd.f32 %v1869_v2, %v4557_v0  ;;  %2555 = vmatprep.mubr.bf16.mxu0 %v5024_v14 }
 0x140   :  { %2668 = vmatprep.mubr.bf16.mxu1 %v5025_v15  ;;  %v1871_v61 = vpop.f32.mrf.mxu0  ;;  %3611 = vmatpush3.bf16.msra.mxu0 %v4135_v56  ;;  %v5033_v56 = vld [vmem:[#allocation24_spill] sm:$0xff]  ;;  %v4148_v15 = vld [vmem:[#allocation8 + $0xf0] sm:$0xff]  }
 0x141   :  { %v1984_v63 = vpop.f32.mrf.mxu1  ;;  %v4585_v26 = vadd.f32 %v1982_v62, %v1870_v48  ;;  %v1872_v8 = vadd.f32 %v1871_v61, %v4560_v37  ;;  %3612 = vmatprep.subr.bf16.mxu0 %v4136_v1  ;;  %v4145_v62 = vld [vmem:[#allocation8] sm:$0xff]   ;;  %v4149_v61 = vld [vmem:[#allocation8 + $0xb0] sm:$0xff]   ;;  %3672 = vmatprep.subr.bf16.mxu1 %v4148_v15 }
 0x142   :  { %v4588_v53 = vpop.f32.mrf.mxu0  ;;  %3673 = vmatpush3.bf16.msra.mxu1 %v4149_v61  ;;  %v4152_v61 = vld [vmem:[#allocation8 + $0xe0] sm:$0xff]  }
 0x143   :  { %v4590_v20 = vpop.f32.mrf.mxu1  ;;  %v4592_v21 = vadd.f32 %v1984_v63, %v1872_v8 }
 0x144   :  { %v4594_v40 = vpop.f32.mrf.mxu0  ;;  %3613 = vmatpush3.bf16.msra.mxu0 %v4137_v25 }
 0x145   :  { %v4596_v41 = vpop.f32.mrf.mxu1  ;;  %3614 = vmatprep.subr.bf16.mxu0 %v4138_v31 }
 0x146   :  { %v1879_v49 = vpop.f32.mrf.mxu0  ;;  %2556 = vmatmul.mubr.bf16.gmra.mxu0 %v5026_v27  ;;  %v5035_v27 = vld [vmem:[#allocation26_spill] sm:$0xff] }
 0x147   :  { %v1992_v50 = vpop.f32.mrf.mxu1  ;;  %2669 = vmatmul.mubr.bf16.gmra.mxu1 %v5027_v4  ;;  %v1880_v5 = vadd.f32 %v1879_v49, %v4557_v0  ;;  %2565 = vmatprep.mubr.bf16.mxu0 %v5028_v16  ;;  %v5037_v16 = vld [vmem:[#allocation28_spill] sm:$0xff] }
 0x148   :  { %2678 = vmatprep.mubr.bf16.mxu1 %v5029_v17  ;;  %v1881_v11 = vpop.f32.mrf.mxu0  ;;  %3615 = vmatpush3.bf16.msra.mxu0 %v4139_v54 }
 0x149   :  { %v1994_v12 = vpop.f32.mrf.mxu1  ;;  %v4603_v10 = vadd.f32 %v1992_v50, %v1880_v5  ;;  %v1882_v33 = vadd.f32 %v1881_v11, %v4560_v37  ;;  %3616 = vmatprep.subr.bf16.mxu0 %v4140_v34  ;;  %v5034_v50 = vld [vmem:[#allocation25_spill] sm:$0xff]  ;;  %v5036_v5 = vld [vmem:[#allocation27_spill] sm:$0xff] }
 0x14a   :  { %v4606_v46 = vpop.f32.mrf.mxu0 }
 0x14b   :  { %v4608_v29 = vpop.f32.mrf.mxu1  ;;  %v4610_v36 = vadd.f32 %v1994_v12, %v1882_v33  ;;  %v4150_v33 = vld [vmem:[#allocation8 + $0xe8] sm:$0xff]  }
 0x14c   :  { %v4612_v3 = vpop.f32.mrf.mxu0  ;;  %3617 = vmatpush3.bf16.msra.mxu0 %v4141_v7  ;;  %3674 = vmatprep.subr.bf16.mxu1 %v4150_v33 }
 0x14d   :  { %v4614_v19 = vpop.f32.mrf.mxu1  ;;  %3618 = vmatprep.subr.bf16.mxu0 %v4142_v23  ;;  %v4151_v23 = vld [vmem:[#allocation8 + $0xa8] sm:$0xff]  }
 0x14e   :  { %v1889_v13 = vpop.f32.mrf.mxu0  ;;  %2566 = vmatmul.mubr.bf16.gmra.mxu0 %v5030_v42  ;;  %3675 = vmatpush3.bf16.msra.mxu1 %v4151_v23 }
 0x14f   :  { %v2002_v18 = vpop.f32.mrf.mxu1  ;;  %2679 = vmatmul.mubr.bf16.gmra.mxu1 %v5031_v35  ;;  %v1890_v58 = vadd.f32 %v1889_v13, %v4557_v0  ;;  %2575 = vmatprep.mubr.bf16.mxu0 %v5032_v59  ;;  %v5038_v35 = vld [vmem:[#allocation29_spill] sm:$0xff] }
 0x150   :  { %2688 = vmatprep.mubr.bf16.mxu1 %v5033_v56  ;;  %v1891_v1 = vpop.f32.mrf.mxu0  ;;  %3619 = vmatpush3.bf16.msra.mxu0 %v4143_v43  ;;  %v5040_v56 = vld [vmem:[#allocation31_spill] sm:$0xff] }
 0x151   :  { %v2004_v2 = vpop.f32.mrf.mxu1  ;;  %v4621_v48 = vadd.f32 %v2002_v18, %v1890_v58  ;;  %v1892_v14 = vadd.f32 %v1891_v1, %v4560_v37  ;;  %3620 = vmatprep.subr.bf16.mxu0 %v4144_v44  ;;  %v5039_v58 = vld [vmem:[#allocation30_spill] sm:$0xff]  ;;  %v5041_v1 = vld [vmem:[#allocation32_spill] sm:$0xff]  ;;  %3676 = vmatprep.subr.bf16.mxu1 %v4152_v61 }
 0x152   :  { %v4624_v63 = vpop.f32.mrf.mxu0 }
 0x153   :  { %v4626_v25 = vpop.f32.mrf.mxu1  ;;  %v4628_v8 = vadd.f32 %v2004_v2, %v1892_v14 }
 0x154   :  { %v4630_v31 = vpop.f32.mrf.mxu0  ;;  %3621 = vmatpush3.bf16.msra.mxu0 %v4145_v62 }
 0x155   :  { %v4632_v54 = vpop.f32.mrf.mxu1 }
 0x156   :  { %v1899_v34 = vpop.f32.mrf.mxu0  ;;  %2576 = vmatmul.mubr.bf16.gmra.mxu0 %v5034_v50 }
 0x157   :  { %v2012_v49 = vpop.f32.mrf.mxu1  ;;  %2689 = vmatmul.mubr.bf16.gmra.mxu1 %v5035_v27  ;;  %v1900_v4 = vadd.f32 %v1899_v34, %v4557_v0  ;;  %2585 = vmatprep.mubr.bf16.mxu0 %v5036_v5  ;;  %v4153_v34 = vld [vmem:[#allocation8 + $0xa0] sm:$0xff]  }
 0x158   :  { %2698 = vmatprep.mubr.bf16.mxu1 %v5037_v16  ;;  %v1901_v17 = vpop.f32.mrf.mxu0  ;;  %3677 = vmatpush3.bf16.msra.mxu1 %v4153_v34  ;;  %v4156_v34 = vld [vmem:[#allocation8 + $0xd0] sm:$0xff]  }
 0x159   :  { %v2014_v11 = vpop.f32.mrf.mxu1  ;;  %v4639_v12 = vadd.f32 %v2012_v49, %v1900_v4  ;;  %v1902_v7 = vadd.f32 %v1901_v17, %v4560_v37 }
 0x15a   :  { %v4642_v24 = vpop.f32.mrf.mxu0 }
 0x15b   :  { %v4644_v45 = vpop.f32.mrf.mxu1  ;;  %v4646_v43 = vadd.f32 %v2014_v11, %v1902_v7 }
 0x15c   :  { %v4648_v44 = vpop.f32.mrf.mxu0 }
 0x15d   :  { %v4650_v13 = vpop.f32.mrf.mxu1 }
 0x15e   :  { %v1909_v18 = vpop.f32.mrf.mxu0  ;;  %2586 = vmatmul.mubr.bf16.gmra.mxu0 %v5038_v35  ;;  %v4155_v35 = vld [vmem:[#allocation8 + $0x98] sm:$0xff]  }
 0x15f   :  { %v2022_v42 = vpop.f32.mrf.mxu1  ;;  %2699 = vmatmul.mubr.bf16.gmra.mxu1 %v5039_v58  ;;  %v1910_v59 = vadd.f32 %v1909_v18, %v4557_v0  ;;  %2595 = vmatprep.mubr.bf16.mxu0 %v5040_v56 }
 0x160   :  { %2708 = vmatprep.mubr.bf16.mxu1 %v5041_v1  ;;  %v1911_v2 = vpop.f32.mrf.mxu0 }
 0x161   :  { %v2024_v62 = vpop.f32.mrf.mxu1  ;;  %v4657_v14 = vadd.f32 %v2022_v42, %v1910_v59  ;;  %v1912_v15 = vadd.f32 %v1911_v2, %v4560_v37  ;;  %v4154_v42 = vld [vmem:[#allocation8 + $0xd8] sm:$0xff]  }
 0x162   :  { %v4660_v49 = vpop.f32.mrf.mxu0  ;;  %3678 = vmatprep.subr.bf16.mxu1 %v4154_v42 }
 0x163   :  { %v4662_v50 = vpop.f32.mrf.mxu1  ;;  %v4664_v27 = vadd.f32 %v2024_v62, %v1912_v15  ;;  %3679 = vmatpush3.bf16.msra.mxu1 %v4155_v35  ;;  %v1866_v35 = vadd.f32 %v4576_v51, %v4560_v37  ;;  %v1874_v51 = vadd.f32 %v4588_v53, %v4557_v0 }
 0x164   :  { %v4666_v4 = vpop.f32.mrf.mxu0  ;;  %3680 = vmatprep.subr.bf16.mxu1 %v4156_v34 }
 0x165   :  { %v4668_v5 = vpop.f32.mrf.mxu1 }
 0x166   :  { %v1919_v16 = vpop.f32.mrf.mxu0  ;;  %2596 = vmatmul.mubr.bf16.gmra.mxu0 %v4498_v60 }
 0x167   :  { %v2032_v17 = vpop.f32.mrf.mxu1  ;;  %2709 = vmatmul.mubr.bf16.gmra.mxu1 %v4500_v52  ;;  %v1920_v11 = vadd.f32 %v1919_v16, %v4557_v0  ;;  %2605 = vmatprep.mubr.bf16.mxu0 %v4502_v6  ;;  %v4157_v16 = vld [vmem:[#allocation8 + $0x90] sm:$0xff]  }
 0x168   :  { %2718 = vmatprep.mubr.bf16.mxu1 %v4504_v28  ;;  %v1921_v7 = vpop.f32.mrf.mxu0  ;;  %3681 = vmatpush3.bf16.msra.mxu1 %v4157_v16  ;;  %v1979_v16 = vadd.f32 %v4578_v55, %v1866_v35 }
 0x169   :  { %v2034_v33 = vpop.f32.mrf.mxu1  ;;  %v4675_v23 = vadd.f32 %v2032_v17, %v1920_v11  ;;  %v1922_v18 = vadd.f32 %v1921_v7, %v4560_v37 }
 0x16a   :  { %v4678_v58 = vpop.f32.mrf.mxu0 }
 0x16b   :  { %v4680_v59 = vpop.f32.mrf.mxu1  ;;  %v4682_v60 = vadd.f32 %v2034_v33, %v1922_v18  ;;  %v1864_v33 = vadd.f32 %v4570_v57, %v4557_v0  ;;  %v4159_v57 = vld [vmem:[#allocation8 + $0x88] sm:$0xff]  }
 0x16c   :  { %v4684_v52 = vpop.f32.mrf.mxu0 }
 0x16d   :  { %v4686_v6 = vpop.f32.mrf.mxu1 }
 0x16e   :  { %v1929_v28 = vpop.f32.mrf.mxu0  ;;  %2606 = vmatmul.mubr.bf16.gmra.mxu0 %v4510_v30 }
 0x16f   :  { %v2042_v56 = vpop.f32.mrf.mxu1  ;;  %2719 = vmatmul.mubr.bf16.gmra.mxu1 %v4512_v22  ;;  %v1930_v1 = vadd.f32 %v1929_v28, %v4557_v0 }
 0x170   :  { %v1931_v2 = vpop.f32.mrf.mxu0 }
 0x171   :  { %v2044_v62 = vpop.f32.mrf.mxu1  ;;  %v4691_v15 = vadd.f32 %v2042_v56, %v1930_v1  ;;  %v1932_v61 = vadd.f32 %v1931_v2, %v4560_v37  ;;  %v1977_v1 = vadd.f32 %v4572_v38, %v1864_v33 }
 0x172   :  { %v4694_v17 = vpop.f32.mrf.mxu0 }
 0x173   :  { %5042 = vst [vmem:[#allocation15_spill] sm:$0xff] %v4691_v15  ;;  %5043 = vst [vmem:[#allocation16_spill] sm:$0xff] %v4694_v17  ;;  %v4696_v11 = vpop.f32.mrf.mxu1  ;;  %v4698_v7 = vadd.f32 %v2044_v62, %v1932_v61 }
 0x174   :  { %5044 = vst [vmem:[#allocation17_spill] sm:$0xff] %v4696_v11  ;;  %v4700_v30 = vpop.f32.mrf.mxu0 }
 0x175   :  { %5045 = vst [vmem:[#allocation18_spill] sm:$0xff] %v4698_v7  ;;  %5046 = vst [vmem:[#allocation19_spill] sm:$0xff] %v4700_v30  ;;  %v4702_v22 = vpop.f32.mrf.mxu1 }
 0x176   :  { %5047 = vst [vmem:[#allocation20_spill] sm:$0xff] %v4702_v22  ;;  %v2085_v18 = vpop.f32.mrf.mxu0  ;;  %v4158_v22 = vld [vmem:[#allocation8 + $0xc8] sm:$0xff]  }
 0x177   :  { %v2198_v42 = vpop.f32.mrf.mxu1  ;;  %v2086_v62 = vadd.f32 %v2085_v18, %v4567_v9  ;;  %3682 = vmatprep.subr.bf16.mxu1 %v4158_v22  ;;  %v1876_v9 = vadd.f32 %v4594_v40, %v4560_v37 }
 0x178   :  { %v2087_v28 = vpop.f32.mrf.mxu0  ;;  %3683 = vmatpush3.bf16.msra.mxu1 %v4159_v57 }
 0x179   :  { %v2200_v56 = vpop.f32.mrf.mxu1  ;;  %v2088_v2 = vadd.f32 %v2087_v28, %v4574_v39  ;;  %v2199_v38 = vadd.f32 %v2198_v42, %v2086_v62  ;;  %v1989_v40 = vadd.f32 %v4596_v41, %v1876_v9  ;;  %v1886_v41 = vadd.f32 %v4612_v3, %v4560_v37 }
 0x17a   :  { %v2089_v61 = vpop.f32.mrf.mxu0 }
 0x17b   :  { %v2202_v34 = vpop.f32.mrf.mxu1  ;;  %v2090_v47 = vadd.f32 %v2089_v61, %v1977_v1  ;;  %v2201_v11 = vadd.f32 %v2200_v56, %v2088_v2  ;;  %v4160_v1 = vld [vmem:[#allocation8 + $0xc0] sm:$0xff]   ;;  %v1987_v61 = vadd.f32 %v4590_v20, %v1874_v51  ;;  %v2729_v22 = vmax.f32 %v2199_v38, 0.0 }
 0x17c   :  { %v2091_v15 = vpop.f32.mrf.mxu0  ;;  %3684 = vmatprep.subr.bf16.mxu1 %v4160_v1  ;;  %v1884_v20 = vadd.f32 %v4606_v46, %v4557_v0 }
 0x17d   :  { %v2204_v7 = vpop.f32.mrf.mxu1  ;;  %v2203_v32 = vadd.f32 %v2202_v34, %v2090_v47  ;;  %v2092_v30 = vadd.f32 %v2091_v15, %v1979_v16  ;;  %v2730_v17 = vmax.f32 %v2201_v11, 0.0  ;;  %v4161_v15 = vld [vmem:[#allocation8 + $0x80] sm:$0xff]  }
 0x17e   :  { %v2095_v39 = vpop.f32.mrf.mxu0  ;;  %3685 = vmatpush3.bf16.msra.mxu1 %v4161_v15 }
 0x17f   :  { %v2208_v33 = vpop.f32.mrf.mxu1  ;;  %v2205_v55 = vadd.f32 %v2204_v7, %v2092_v30  ;;  %v2733_v18 = vmax.f32 %v2203_v32, 0.0  ;;  %v2096_v42 = vadd.f32 %v2095_v39, %v4585_v26 }
 0x180   :  { %v2097_v35 = vpop.f32.mrf.mxu0 }
 0x181   :  { %v2210_v28 = vpop.f32.mrf.mxu1  ;;  %v2734_v53 = vmax.f32 %v2205_v55, 0.0  ;;  %v2098_v47 = vadd.f32 %v2097_v35, %v4592_v21  ;;  %v2793_v30 = vpack.c.bf16 %v2733_v18, %v2729_v22  ;;  %v2209_v57 = vadd.f32 %v2208_v33, %v2096_v42 }
 0x182   :  { %v2099_v56 = vpop.f32.mrf.mxu0  ;;  %v1997_v55 = vadd.f32 %v4608_v29, %v1884_v20 }
 0x183   :  { %v2212_v2 = vpop.f32.mrf.mxu1  ;;  %v2100_v7 = vadd.f32 %v2099_v56, %v1987_v61  ;;  %v2794_v32 = vpack.c.bf16 %v2734_v53, %v2730_v17  ;;  %v2211_v11 = vadd.f32 %v2210_v28, %v2098_v47  ;;  %v2737_v28 = vmax.f32 %v2209_v57, 0.0 }
 0x184   :  { %v2101_v62 = vpop.f32.mrf.mxu0  ;;  %v1999_v53 = vadd.f32 %v4614_v19, %v1886_v41  ;;  %v1894_v56 = vadd.f32 %v4624_v63, %v4557_v0 }
 0x185   :  { %v2214_v34 = vpop.f32.mrf.mxu1  ;;  %v2213_v21 = vadd.f32 %v2212_v2, %v2100_v7  ;;  %v2102_v16 = vadd.f32 %v2101_v62, %v1989_v40  ;;  %3120 = vmatprep.mubr.bf16.mxu0 %v2794_v32  ;;  %v2738_v18 = vmax.f32 %v2211_v11, 0.0 }
 0x186   :  { %v2105_v26 = vpop.f32.mrf.mxu0  ;;  %3121 = vmatmul.mubr.bf16.vlgmr.msra.gmra.mxu0 %v2793_v30  ;;  %v2007_v20 = vadd.f32 %v4626_v25, %v1894_v56 }
 0x187   :  { %v2218_v51 = vpop.f32.mrf.mxu1  ;;  %v2215_v38 = vadd.f32 %v2214_v34, %v2102_v16  ;;  %v2741_v17 = vmax.f32 %v2213_v21, 0.0  ;;  %v2106_v1 = vadd.f32 %v2105_v26, %v4603_v10  ;;  %v1896_v10 = vadd.f32 %v4630_v31, %v4560_v37 }
 0x188   :  { %v2107_v39 = vpop.f32.mrf.mxu0 }
 0x189   :  { %v2220_v9 = vpop.f32.mrf.mxu1  ;;  %v2742_v35 = vmax.f32 %v2215_v38, 0.0  ;;  %v2108_v46 = vadd.f32 %v2107_v39, %v4610_v36  ;;  %v2797_v3 = vpack.c.bf16 %v2741_v17, %v2737_v28  ;;  %v2219_v36 = vadd.f32 %v2218_v51, %v2106_v1 }
 0x18a   :  { %v2109_v33 = vpop.f32.mrf.mxu0  ;;  %v2009_v41 = vadd.f32 %v4632_v54, %v1896_v10 }
 0x18b   :  { %v2222_v61 = vpop.f32.mrf.mxu1  ;;  %v2110_v47 = vadd.f32 %v2109_v33, %v1997_v55  ;;  %v2798_v15 = vpack.c.bf16 %v2742_v35, %v2738_v18  ;;  %v2221_v29 = vadd.f32 %v2220_v9, %v2108_v46  ;;  %v2745_v16 = vmax.f32 %v2219_v36, 0.0 }
 0x18c   :  { %v2111_v22 = vpop.f32.mrf.mxu0  ;;  %v1904_v55 = vadd.f32 %v4642_v24, %v4557_v0 }
 0x18d   :  { %v2224_v42 = vpop.f32.mrf.mxu1  ;;  %v2223_v2 = vadd.f32 %v2222_v61, %v2110_v47  ;;  %v2112_v40 = vadd.f32 %v2111_v22, %v1999_v53  ;;  %3128 = vmatprep.mubr.bf16.mxu0 %v2798_v15  ;;  %v2746_v11 = vmax.f32 %v2221_v29, 0.0 }
 0x18e   :  { %v2115_v7 = vpop.f32.mrf.mxu0  ;;  %3129 = vmatmul.mubr.bf16.gmra.mxu0 %v2797_v3  ;;  %v2017_v53 = vadd.f32 %v4644_v45, %v1904_v55  ;;  %v1924_v55 = vadd.f32 %v4678_v58, %v4557_v0 }
 0x18f   :  { %v2228_v32 = vpop.f32.mrf.mxu1  ;;  %v2225_v19 = vadd.f32 %v2224_v42, %v2112_v40  ;;  %v2749_v30 = vmax.f32 %v2223_v2, 0.0  ;;  %v2116_v57 = vadd.f32 %v2115_v7, %v4621_v48  ;;  %v1906_v48 = vadd.f32 %v4648_v44, %v4560_v37 }
 0x190   :  { %v2117_v62 = vpop.f32.mrf.mxu0 }
 0x191   :  { %v2230_v34 = vpop.f32.mrf.mxu1  ;;  %v2750_v21 = vmax.f32 %v2225_v19, 0.0  ;;  %v2118_v63 = vadd.f32 %v2117_v62, %v4628_v8  ;;  %v2801_v31 = vpack.c.bf16 %v2749_v30, %v2745_v16  ;;  %v2229_v8 = vadd.f32 %v2228_v32, %v2116_v57 }
 0x192   :  { %v2119_v26 = vpop.f32.mrf.mxu0  ;;  %v2019_v29 = vadd.f32 %v4650_v13, %v1906_v48  ;;  %v1914_v32 = vadd.f32 %v4660_v49, %v4557_v0 }
 0x193   :  { %v2232_v51 = vpop.f32.mrf.mxu1  ;;  %v2120_v38 = vadd.f32 %v2119_v26, %v2007_v20  ;;  %v2802_v17 = vpack.c.bf16 %v2750_v21, %v2746_v11  ;;  %v2231_v25 = vadd.f32 %v2230_v34, %v2118_v63  ;;  %v2753_v3 = vmax.f32 %v2229_v8, 0.0 }
 0x194   :  { %v2121_v39 = vpop.f32.mrf.mxu0  ;;  %v2027_v21 = vadd.f32 %v4662_v50, %v1914_v32 }
 0x195   :  { %v2234_v9 = vpop.f32.mrf.mxu1  ;;  %v2233_v18 = vadd.f32 %v2232_v51, %v2120_v38  ;;  %v2122_v35 = vadd.f32 %v2121_v39, %v2009_v41  ;;  %3136 = vmatprep.mubr.bf16.mxu0 %v2802_v17  ;;  %v2754_v47 = vmax.f32 %v2231_v25, 0.0 }
 0x196   :  { %v2125_v46 = vpop.f32.mrf.mxu0  ;;  %3137 = vmatmul.mubr.bf16.gmra.mxu0 %v2801_v31 }
 0x197   :  { %v2238_v28 = vpop.f32.mrf.mxu1  ;;  %v2235_v54 = vadd.f32 %v2234_v9, %v2122_v35  ;;  %v2757_v1 = vmax.f32 %v2233_v18, 0.0  ;;  %v2126_v22 = vadd.f32 %v2125_v46, %v4639_v12  ;;  %v1916_v12 = vadd.f32 %v4666_v4, %v4560_v37 }
 0x198   :  { %v2127_v33 = vpop.f32.mrf.mxu0 }
 0x199   :  { %v2240_v61 = vpop.f32.mrf.mxu1  ;;  %v2758_v15 = vmax.f32 %v2235_v54, 0.0  ;;  %v2128_v24 = vadd.f32 %v2127_v33, %v4646_v43  ;;  %v2805_v44 = vpack.c.bf16 %v2757_v1, %v2753_v3  ;;  %v2239_v43 = vadd.f32 %v2238_v28, %v2126_v22 }
 0x19a   :  { %v2129_v42 = vpop.f32.mrf.mxu0  ;;  %v2029_v38 = vadd.f32 %v4668_v5, %v1916_v12  ;;  %v2037_v54 = vadd.f32 %v4680_v59, %v1924_v55 }
 0x19b   :  { %v2242_v56 = vpop.f32.mrf.mxu1  ;;  %v2130_v2 = vadd.f32 %v2129_v42, %v2017_v53  ;;  %v2806_v40 = vpack.c.bf16 %v2758_v15, %v2754_v47  ;;  %v2241_v45 = vadd.f32 %v2240_v61, %v2128_v24  ;;  %v2761_v57 = vmax.f32 %v2239_v43, 0.0 }
 0x19c   :  { %v2131_v36 = vpop.f32.mrf.mxu0 }
 0x19d   :  { %v2244_v7 = vpop.f32.mrf.mxu1  ;;  %v2243_v10 = vadd.f32 %v2242_v56, %v2130_v2  ;;  %v2132_v19 = vadd.f32 %v2131_v36, %v2019_v29  ;;  %3144 = vmatprep.mubr.bf16.mxu0 %v2806_v40  ;;  %v2762_v63 = vmax.f32 %v2241_v45, 0.0  ;;  %v5048_v29 = vld [vmem:[#allocation16_spill] sm:$0xff]  ;;  %v5050_v45 = vld [vmem:[#allocation33_spill] sm:$0xff] }
 0x19e   :  { %v2135_v30 = vpop.f32.mrf.mxu0  ;;  %3145 = vmatmul.mubr.bf16.gmra.mxu0 %v2805_v44  ;;  %v1934_v2 = vadd.f32 %v5048_v29, %v4557_v0  ;;  %v5051_v0 = vld [vmem:[#allocation17_spill] sm:$0xff] }
 0x19f   :  { %v2248_v62 = vpop.f32.mrf.mxu1  ;;  %v2245_v13 = vadd.f32 %v2244_v7, %v2132_v19  ;;  %v2765_v34 = vmax.f32 %v2243_v10, 0.0  ;;  %v2136_v26 = vadd.f32 %v2135_v30, %v4657_v14  ;;  %v1926_v14 = vadd.f32 %v4684_v52, %v4560_v37 }
 0x1a0   :  { %v2137_v20 = vpop.f32.mrf.mxu0  ;;  %v535_v10 = vsub.s32 2, %v5050_v45  ;;  %v2047_v12 = vadd.f32 %v5051_v0, %v1934_v2 }
 0x1a1   :  { %v2250_v11 = vpop.f32.mrf.mxu1  ;;  %v2766_v16 = vmax.f32 %v2245_v13, 0.0  ;;  %v2138_v49 = vadd.f32 %v2137_v20, %v4664_v27  ;;  %v2809_v4 = vpack.c.bf16 %v2765_v34, %v2761_v57  ;;  %v2249_v27 = vadd.f32 %v2248_v62, %v2136_v26  ;;  %v5052_v20 = vld [vmem:[#allocation18_spill] sm:$0xff] }
 0x1a2   :  { %v2139_v51 = vpop.f32.mrf.mxu0  ;;  %v2039_v24 = vadd.f32 %v4686_v6, %v1926_v14  ;;  %v539_v62 = vsub.s32 3, %v5050_v45 }
 0x1a3   :  { %v2252_v41 = vpop.f32.mrf.mxu1  ;;  %v2810_v17 = vpack.c.bf16 %v2766_v16, %v2762_v63  ;;  %v2140_v31 = vadd.f32 %v2139_v51, %v2027_v21  ;;  %v2251_v50 = vadd.f32 %v2250_v11, %v2138_v49  ;;  %v2769_v61 = vmax.f32 %v2249_v27, 0.0  ;;  %v5053_v63 = vld [vmem:[#allocation15_spill] sm:$0xff] }
 0x1a4   :  { %v2141_v39 = vpop.f32.mrf.mxu0 }
 0x1a5   :  { %v2254_v9 = vpop.f32.mrf.mxu1  ;;  %v2253_v25 = vadd.f32 %v2252_v41, %v2140_v31  ;;  %v2142_v18 = vadd.f32 %v2141_v39, %v2029_v38  ;;  %3152 = vmatprep.mubr.bf16.mxu0 %v2810_v17  ;;  %v2770_v1 = vmax.f32 %v2251_v50, 0.0  ;;  %v5055_v38 = vld [vmem:[#allocation34_spill] sm:$0xff] }
 0x1a6   :  { %v2145_v35 = vpop.f32.mrf.mxu0  ;;  %3153 = vmatmul.mubr.bf16.gmra.mxu0 %v2809_v4  ;;  %v4771_v17 = vrot.slane %v5055_v38, %v535_v10 }
 0x1a7   :  { %v2258_v8 = vpop.f32.mrf.mxu1  ;;  %v2255_v5 = vadd.f32 %v2254_v9, %v2142_v18  ;;  %v2773_v46 = vmax.f32 %v2253_v25, 0.0  ;;  %v2146_v53 = vadd.f32 %v2145_v35, %v4675_v23  ;;  %v5049_v23 = vld [vmem:[#allocation19_spill] sm:$0xff]  ;;  %v4774_v25 = vrot.slane %v5055_v38, %v539_v62 }
 0x1a8   :  { %v2147_v28 = vpop.f32.mrf.mxu0  ;;  %v1936_v32 = vadd.f32 %v5049_v23, %v4560_v37  ;;  %v5054_v37 = vld [vmem:[#allocation20_spill] sm:$0xff] }
 0x1a9   :  { %v2260_v48 = vpop.f32.mrf.mxu1  ;;  %v2774_v33 = vmax.f32 %v2255_v5, 0.0  ;;  %v2148_v58 = vadd.f32 %v2147_v28, %v4682_v60  ;;  %v2813_v52 = vpack.c.bf16 %v2773_v46, %v2769_v61  ;;  %v2259_v60 = vadd.f32 %v2258_v8, %v2146_v53 }
 0x1aa   :  { %v2149_v47 = vpop.f32.mrf.mxu0  ;;  %v2049_v26 = vadd.f32 %v5054_v37, %v1936_v32 }
 0x1ab   :  { %v2262_v15 = vpop.f32.mrf.mxu1  ;;  %v2814_v3 = vpack.c.bf16 %v2774_v33, %v2770_v1  ;;  %v2150_v22 = vadd.f32 %v2149_v47, %v2037_v54  ;;  %v2261_v59 = vadd.f32 %v2260_v48, %v2148_v58  ;;  %v2777_v21 = vmax.f32 %v2259_v60, 0.0 }
 0x1ac   :  { %v2151_v42 = vpop.f32.mrf.mxu0 }
 0x1ad   :  { %v2264_v56 = vpop.f32.mrf.mxu1  ;;  %v2263_v40 = vadd.f32 %v2262_v15, %v2150_v22  ;;  %v2152_v44 = vadd.f32 %v2151_v42, %v2039_v24  ;;  %3160 = vmatprep.mubr.bf16.mxu0 %v2814_v3  ;;  %v2778_v13 = vmax.f32 %v2261_v59, 0.0 }
 0x1ae   :  { %v2155_v36 = vpop.f32.mrf.mxu0  ;;  %3161 = vmatmul.mubr.bf16.gmra.mxu0 %v2813_v52 }
 0x1af   :  { %v2268_v7 = vpop.f32.mrf.mxu1  ;;  %v2265_v6 = vadd.f32 %v2264_v56, %v2152_v44  ;;  %v2781_v19 = vmax.f32 %v2263_v40, 0.0  ;;  %v2156_v16 = vadd.f32 %v2155_v36, %v5053_v63 }
 0x1b0   :  { %v2157_v43 = vpop.f32.mrf.mxu0 }
 0x1b1   :  { %v2270_v30 = vpop.f32.mrf.mxu1  ;;  %v2782_v34 = vmax.f32 %v2265_v6, 0.0  ;;  %v2158_v11 = vadd.f32 %v2157_v43, %v5052_v20  ;;  %v2817_v31 = vpack.c.bf16 %v2781_v19, %v2777_v21  ;;  %v2269_v18 = vadd.f32 %v2268_v7, %v2156_v16 }
 0x1b2   :  { %v2159_v49 = vpop.f32.mrf.mxu0 }
 0x1b3   :  { %v2272_v57 = vpop.f32.mrf.mxu1  ;;  %v2818_v51 = vpack.c.bf16 %v2782_v34, %v2778_v13  ;;  %v2160_v41 = vadd.f32 %v2159_v49, %v2047_v12  ;;  %v2271_v9 = vadd.f32 %v2270_v30, %v2158_v11  ;;  %v2785_v58 = vmax.f32 %v2269_v18, 0.0 }
 0x1b4   :  { %v2161_v4 = vpop.f32.mrf.mxu0 }
 0x1b5   :  { %v2274_v39 = vpop.f32.mrf.mxu1  ;;  %v2273_v55 = vadd.f32 %v2272_v57, %v2160_v41  ;;  %v2162_v50 = vadd.f32 %v2161_v4, %v2049_v26  ;;  %3168 = vmatprep.mubr.bf16.mxu0 %v2818_v51  ;;  %v2786_v48 = vmax.f32 %v2271_v9, 0.0 }
 0x1b6   :  { %v2311_v27 = vpop.f32.mrf.mxu0  ;;  %3169 = vmatmul.mubr.bf16.gmra.mxu0 %v2817_v31 }
 0x1b7   :  { %v2424_v35 = vpop.f32.mrf.mxu1  ;;  %v2275_v8 = vadd.f32 %v2274_v39, %v2162_v50  ;;  %v2312_v14 = vadd.f32 %v2311_v27, %v4771_v17  ;;  %v2789_v5 = vmax.f32 %v2273_v55, 0.0 }
 0x1b8   :  { %v2313_v46 = vpop.f32.mrf.mxu0 }
 0x1b9   :  { %v2426_v28 = vpop.f32.mrf.mxu1  ;;  %v2790_v54 = vmax.f32 %v2275_v8, 0.0  ;;  %v4777_v1 = vadd.f32 %v2424_v35, %v2312_v14  ;;  %v2314_v33 = vadd.f32 %v2313_v46, %v4774_v25  ;;  %v2821_v24 = vpack.c.bf16 %v2789_v5, %v2785_v58 }
 0x1ba   :  { %v4780_v61 = vpop.f32.mrf.mxu0 }
 0x1bb   :  { %v4782_v53 = vpop.f32.mrf.mxu1  ;;  %v2822_v47 = vpack.c.bf16 %v2790_v54, %v2786_v48  ;;  %v4784_v15 = vadd.f32 %v2426_v28, %v2314_v33 }
 0x1bc   :  { %v4786_v3 = vpop.f32.mrf.mxu0 }
 0x1bd   :  { %v4788_v22 = vpop.f32.mrf.mxu1  ;;  %3176 = vmatprep.mubr.bf16.mxu0 %v2822_v47 }
 0x1be   :  { %v2321_v52 = vpop.f32.mrf.mxu0  ;;  %3177 = vmatmul.mubr.bf16.gmra.mxu0 %v2821_v24 }
 0x1bf   :  { %v2434_v42 = vpop.f32.mrf.mxu1  ;;  %v2322_v56 = vadd.f32 %v2321_v52, %v4771_v17 }
 0x1c0   :  { %v2323_v29 = vpop.f32.mrf.mxu0 }
 0x1c1   :  { %v2436_v2 = vpop.f32.mrf.mxu1  ;;  %v4791_v59 = vadd.f32 %v2434_v42, %v2322_v56  ;;  %v2324_v40 = vadd.f32 %v2323_v29, %v4774_v25 }
 0x1c2   :  { %v4794_v44 = vpop.f32.mrf.mxu0 }
 0x1c3   :  { %v4796_v60 = vpop.f32.mrf.mxu1  ;;  %v4798_v36 = vadd.f32 %v2436_v2, %v2324_v40 }
 0x1c4   :  { %v4800_v7 = vpop.f32.mrf.mxu0 }
 0x1c5   :  { %v4802_v23 = vpop.f32.mrf.mxu1 }
 0x1c6   :  { %v2331_v32 = vpop.f32.mrf.mxu0 }
 0x1c7   :  { %v2444_v6 = vpop.f32.mrf.mxu1  ;;  %v2332_v45 = vadd.f32 %v2331_v32, %v4771_v17 }
 0x1c8   :  { %v2333_v10 = vpop.f32.mrf.mxu0 }
 0x1c9   :  { %v2446_v19 = vpop.f32.mrf.mxu1  ;;  %v4805_v43 = vadd.f32 %v2444_v6, %v2332_v45  ;;  %v2334_v30 = vadd.f32 %v2333_v10, %v4774_v25 }
 0x1ca   :  { %v4808_v62 = vpop.f32.mrf.mxu0 }
 0x1cb   :  { %v4810_v0 = vpop.f32.mrf.mxu1  ;;  %v4812_v12 = vadd.f32 %v2446_v19, %v2334_v30 }
 0x1cc   :  { %v4814_v13 = vpop.f32.mrf.mxu0 }
 0x1cd   :  { %v4816_v34 = vpop.f32.mrf.mxu1 }
 0x1ce   :  { %v2341_v20 = vpop.f32.mrf.mxu0 }
 0x1cf   :  { %v2454_v11 = vpop.f32.mrf.mxu1  ;;  %v2342_v21 = vadd.f32 %v2341_v20, %v4771_v17 }
 0x1d0   :  { %v2343_v63 = vpop.f32.mrf.mxu0 }
 0x1d1   :  { %v2456_v16 = vpop.f32.mrf.mxu1  ;;  %v4819_v49 = vadd.f32 %v2454_v11, %v2342_v21  ;;  %v2344_v57 = vadd.f32 %v2343_v63, %v4774_v25 }
 0x1d2   :  { %v4822_v37 = vpop.f32.mrf.mxu0 }
 0x1d3   :  { %v4824_v26 = vpop.f32.mrf.mxu1  ;;  %v4826_v51 = vadd.f32 %v2456_v16, %v2344_v57 }
 0x1d4   :  { %v4828_v41 = vpop.f32.mrf.mxu0 }
 0x1d5   :  { %v4830_v38 = vpop.f32.mrf.mxu1 }
 0x1d6   :  { %v2351_v31 = vpop.f32.mrf.mxu0 }
 0x1d7   :  { %v2464_v4 = vpop.f32.mrf.mxu1  ;;  %v2352_v39 = vadd.f32 %v2351_v31, %v4771_v17 }
 0x1d8   :  { %v2353_v9 = vpop.f32.mrf.mxu0 }
 0x1d9   :  { %v2466_v55 = vpop.f32.mrf.mxu1  ;;  %v4833_v50 = vadd.f32 %v2464_v4, %v2352_v39  ;;  %v2354_v18 = vadd.f32 %v2353_v9, %v4774_v25 }
 0x1da   :  { %v4836_v27 = vpop.f32.mrf.mxu0 }
 0x1db   :  { %v4838_v35 = vpop.f32.mrf.mxu1  ;;  %v4840_v8 = vadd.f32 %v2466_v55, %v2354_v18 }
 0x1dc   :  { %v4842_v14 = vpop.f32.mrf.mxu0 }
 0x1dd   :  { %v4844_v5 = vpop.f32.mrf.mxu1 }
 0x1de   :  { %v2361_v46 = vpop.f32.mrf.mxu0 }
 0x1df   :  { %v2474_v28 = vpop.f32.mrf.mxu1  ;;  %v2362_v48 = vadd.f32 %v2361_v46, %v4771_v17 }
 0x1e0   :  { %v2363_v54 = vpop.f32.mrf.mxu0 }
 0x1e1   :  { %v2476_v33 = vpop.f32.mrf.mxu1  ;;  %v4847_v58 = vadd.f32 %v2474_v28, %v2362_v48  ;;  %v2364_v47 = vadd.f32 %v2363_v54, %v4774_v25 }
 0x1e2   :  { %v4850_v24 = vpop.f32.mrf.mxu0 }
 0x1e3   :  { %v4852_v52 = vpop.f32.mrf.mxu1  ;;  %v4854_v42 = vadd.f32 %v2476_v33, %v2364_v47  ;;  %v2316_v33 = vadd.f32 %v4780_v61, %v4771_v17  ;;  %v2326_v61 = vadd.f32 %v4794_v44, %v4771_v17 }
 0x1e4   :  { %v4856_v56 = vpop.f32.mrf.mxu0 }
 0x1e5   :  { %v4858_v29 = vpop.f32.mrf.mxu1 }
 0x1e6   :  { %v2371_v2 = vpop.f32.mrf.mxu0 }
 0x1e7   :  { %v2484_v40 = vpop.f32.mrf.mxu1  ;;  %v2372_v32 = vadd.f32 %v2371_v2, %v4771_v17 }
 0x1e8   :  { %v2373_v6 = vpop.f32.mrf.mxu0 }
 0x1e9   :  { %v2486_v45 = vpop.f32.mrf.mxu1  ;;  %v4861_v10 = vadd.f32 %v2484_v40, %v2372_v32  ;;  %v2374_v19 = vadd.f32 %v2373_v6, %v4774_v25  ;;  %v2318_v40 = vadd.f32 %v4786_v3, %v4774_v25 }
 0x1ea   :  { %v4864_v30 = vpop.f32.mrf.mxu0 }
 0x1eb   :  { %v4866_v20 = vpop.f32.mrf.mxu1  ;;  %v4868_v11 = vadd.f32 %v2486_v45, %v2374_v19  ;;  %v2429_v19 = vadd.f32 %v4782_v53, %v2316_v33 }
 0x1ec   :  { %v4870_v21 = vpop.f32.mrf.mxu0 }
 0x1ed   :  { %v4872_v63 = vpop.f32.mrf.mxu1 }
 0x1ee   :  { %v2381_v16 = vpop.f32.mrf.mxu0 }
 0x1ef   :  { %v2494_v57 = vpop.f32.mrf.mxu1  ;;  %v2382_v31 = vadd.f32 %v2381_v16, %v4771_v17 }
 0x1f0   :  { %v2383_v4 = vpop.f32.mrf.mxu0 }
 0x1f1   :  { %v2496_v39 = vpop.f32.mrf.mxu1  ;;  %v4875_v9 = vadd.f32 %v2494_v57, %v2382_v31  ;;  %v2384_v55 = vadd.f32 %v2383_v4, %v4774_v25  ;;  %v2431_v4 = vadd.f32 %v4788_v22, %v2318_v40 }
 0x1f2   :  { %v4878_v18 = vpop.f32.mrf.mxu0 }
 0x1f3   :  { %5056 = vst [vmem:[#allocation21_spill] sm:$0xff] %v4875_v9  ;;  %v4880_v46 = vpop.f32.mrf.mxu1  ;;  %v4882_v28 = vadd.f32 %v2496_v39, %v2384_v55 }
 0x1f4   :  { %5057 = vst [vmem:[#allocation22_spill] sm:$0xff] %v4880_v46  ;;  %v4884_v48 = vpop.f32.mrf.mxu0 }
 0x1f5   :  { %5058 = vst [vmem:[#allocation23_spill] sm:$0xff] %v4882_v28  ;;  %v4886_v54 = vpop.f32.mrf.mxu1 }
 0x1f6   :  { %5059 = vst [vmem:[#allocation24_spill] sm:$0xff] %v4886_v54  ;;  %v2537_v47 = vpop.f32.mrf.mxu0 }
 0x1f7   :  { %v2650_v2 = vpop.f32.mrf.mxu1  ;;  %v2538_v32 = vadd.f32 %v2537_v47, %v4777_v1  ;;  %v2328_v47 = vadd.f32 %v4800_v7, %v4774_v25 }
 0x1f8   :  { %v2539_v6 = vpop.f32.mrf.mxu0 }
 0x1f9   :  { %v2652_v45 = vpop.f32.mrf.mxu1  ;;  %v2540_v16 = vadd.f32 %v2539_v6, %v4784_v15  ;;  %v2651_v39 = vadd.f32 %v2650_v2, %v2538_v32  ;;  %v2439_v2 = vadd.f32 %v4796_v60, %v2326_v61  ;;  %v2441_v7 = vadd.f32 %v4802_v23, %v2328_v47 }
 0x1fa   :  { %v2541_v57 = vpop.f32.mrf.mxu0 }
 0x1fb   :  { %v2654_v31 = vpop.f32.mrf.mxu1  ;;  %v2542_v55 = vadd.f32 %v2541_v57, %v2429_v19  ;;  %v2653_v3 = vadd.f32 %v2652_v45, %v2540_v16  ;;  %v2731_v15 = vmax.f32 %v2651_v39, 0.0 }
 0x1fc   :  { %v2543_v54 = vpop.f32.mrf.mxu0 }
 0x1fd   :  { %v2656_v28 = vpop.f32.mrf.mxu1  ;;  %v2655_v46 = vadd.f32 %v2654_v31, %v2542_v55  ;;  %v2544_v1 = vadd.f32 %v2543_v54, %v2431_v4  ;;  %v2732_v44 = vmax.f32 %v2653_v3, 0.0 }
 0x1fe   :  { %v2547_v53 = vpop.f32.mrf.mxu0 }
 0x1ff   :  { %v2660_v33 = vpop.f32.mrf.mxu1  ;;  %v2735_v6 = vmax.f32 %v2655_v46, 0.0  ;;  %v2657_v9 = vadd.f32 %v2656_v28, %v2544_v1  ;;  %v2548_v22 = vadd.f32 %v2547_v53, %v4791_v59  ;;  %v2336_v46 = vadd.f32 %v4808_v62, %v4771_v17 }
 0x200   :  { %v2549_v40 = vpop.f32.mrf.mxu0 }
 0x201   :  { %v2662_v32 = vpop.f32.mrf.mxu1  ;;  %v2795_v19 = vpack.c.bf16 %v2735_v6, %v2731_v15  ;;  %v2736_v57 = vmax.f32 %v2657_v9, 0.0  ;;  %v2550_v45 = vadd.f32 %v2549_v40, %v4798_v36  ;;  %v2661_v4 = vadd.f32 %v2660_v33, %v2548_v22 }
 0x202   :  { %v2551_v54 = vpop.f32.mrf.mxu0  ;;  %v2338_v9 = vadd.f32 %v4814_v13, %v4774_v25  ;;  %v2449_v33 = vadd.f32 %v4810_v0, %v2336_v46 }
 0x203   :  { %v2664_v16 = vpop.f32.mrf.mxu1  ;;  %v2796_v31 = vpack.c.bf16 %v2736_v57, %v2732_v44  ;;  %v2552_v39 = vadd.f32 %v2551_v54, %v2439_v2  ;;  %v2663_v60 = vadd.f32 %v2662_v32, %v2550_v45  ;;  %v2739_v1 = vmax.f32 %v2661_v4, 0.0 }
 0x204   :  { %v2553_v59 = vpop.f32.mrf.mxu0  ;;  %v2451_v13 = vadd.f32 %v4816_v34, %v2338_v9  ;;  %v2346_v54 = vadd.f32 %v4822_v37, %v4771_v17  ;;  %v2348_v4 = vadd.f32 %v4828_v41, %v4774_v25 }
 0x205   :  { %v2666_v28 = vpop.f32.mrf.mxu1  ;;  %v2665_v55 = vadd.f32 %v2664_v16, %v2552_v39  ;;  %v2554_v61 = vadd.f32 %v2553_v59, %v2441_v7  ;;  %3217 = vmatprep.mubr.bf16.mxu1 %v2796_v31  ;;  %v2740_v6 = vmax.f32 %v2663_v60, 0.0 }
 0x206   :  { %v2557_v36 = vpop.f32.mrf.mxu0  ;;  %3218 = vmatmul.mubr.bf16.vlgmr.msra.gmra.mxu1 %v2795_v19  ;;  %v2459_v60 = vadd.f32 %v4824_v26, %v2346_v54  ;;  %v2461_v41 = vadd.f32 %v4830_v38, %v2348_v4 }
 0x207   :  { %v2670_v3 = vpop.f32.mrf.mxu1  ;;  %v2743_v23 = vmax.f32 %v2665_v55, 0.0  ;;  %v2667_v47 = vadd.f32 %v2666_v28, %v2554_v61  ;;  %v2558_v53 = vadd.f32 %v2557_v36, %v4805_v43 }
 0x208   :  { %v2559_v62 = vpop.f32.mrf.mxu0 }
 0x209   :  { %v2672_v15 = vpop.f32.mrf.mxu1  ;;  %v2799_v22 = vpack.c.bf16 %v2743_v23, %v2739_v1  ;;  %v2744_v2 = vmax.f32 %v2667_v47, 0.0  ;;  %v2560_v40 = vadd.f32 %v2559_v62, %v4812_v12  ;;  %v2671_v19 = vadd.f32 %v2670_v3, %v2558_v53 }
 0x20a   :  { %v2561_v32 = vpop.f32.mrf.mxu0  ;;  %v2356_v62 = vadd.f32 %v4836_v27, %v4771_v17 }
 0x20b   :  { %v2674_v44 = vpop.f32.mrf.mxu1  ;;  %v2800_v57 = vpack.c.bf16 %v2744_v2, %v2740_v6  ;;  %v2562_v45 = vadd.f32 %v2561_v32, %v2449_v33  ;;  %v2673_v0 = vadd.f32 %v2672_v15, %v2560_v40  ;;  %v2747_v46 = vmax.f32 %v2671_v19, 0.0 }
 0x20c   :  { %v2563_v43 = vpop.f32.mrf.mxu0  ;;  %v2358_v2 = vadd.f32 %v4842_v14, %v4774_v25 }
 0x20d   :  { %v2676_v16 = vpop.f32.mrf.mxu1  ;;  %v2675_v7 = vadd.f32 %v2674_v44, %v2562_v45  ;;  %v2564_v31 = vadd.f32 %v2563_v43, %v2451_v13  ;;  %3225 = vmatprep.mubr.bf16.mxu1 %v2800_v57  ;;  %v2748_v61 = vmax.f32 %v2673_v0, 0.0  ;;  %v2469_v57 = vadd.f32 %v4838_v35, %v2356_v62 }
 0x20e   :  { %v2567_v12 = vpop.f32.mrf.mxu0  ;;  %3226 = vmatmul.mubr.bf16.gmra.mxu1 %v2799_v22  ;;  %v2471_v14 = vadd.f32 %v4844_v5, %v2358_v2  ;;  %v2378_v2 = vadd.f32 %v4870_v21, %v4774_v25 }
 0x20f   :  { %v2680_v39 = vpop.f32.mrf.mxu1  ;;  %v2751_v34 = vmax.f32 %v2675_v7, 0.0  ;;  %v2677_v59 = vadd.f32 %v2676_v16, %v2564_v31  ;;  %v2568_v28 = vadd.f32 %v2567_v12, %v4819_v49 }
 0x210   :  { %v2569_v37 = vpop.f32.mrf.mxu0  ;;  %v2491_v21 = vadd.f32 %v4872_v63, %v2378_v2 }
 0x211   :  { %v2682_v55 = vpop.f32.mrf.mxu1  ;;  %v2803_v9 = vpack.c.bf16 %v2751_v34, %v2747_v46  ;;  %v2752_v36 = vmax.f32 %v2677_v59, 0.0  ;;  %v2570_v3 = vadd.f32 %v2569_v37, %v4826_v51  ;;  %v2681_v53 = vadd.f32 %v2680_v39, %v2568_v28 }
 0x212   :  { %v2571_v1 = vpop.f32.mrf.mxu0  ;;  %v2366_v39 = vadd.f32 %v4850_v24, %v4771_v17  ;;  %v2368_v28 = vadd.f32 %v4856_v56, %v4774_v25 }
 0x213   :  { %v2684_v23 = vpop.f32.mrf.mxu1  ;;  %v2804_v47 = vpack.c.bf16 %v2752_v36, %v2748_v61  ;;  %v2572_v33 = vadd.f32 %v2571_v1, %v2459_v60  ;;  %v2683_v26 = vadd.f32 %v2682_v55, %v2570_v3  ;;  %v2755_v32 = vmax.f32 %v2681_v53, 0.0 }
 0x214   :  { %v2573_v49 = vpop.f32.mrf.mxu0  ;;  %v2481_v56 = vadd.f32 %v4858_v29, %v2368_v28  ;;  %v5061_v28 = vld [vmem:[#allocation22_spill] sm:$0xff] }
 0x215   :  { %v2686_v15 = vpop.f32.mrf.mxu1  ;;  %v2685_v6 = vadd.f32 %v2684_v23, %v2572_v33  ;;  %v2574_v22 = vadd.f32 %v2573_v49, %v2461_v41  ;;  %3233 = vmatprep.mubr.bf16.mxu1 %v2804_v47  ;;  %v2756_v45 = vmax.f32 %v2683_v26, 0.0 }
 0x216   :  { %v2577_v51 = vpop.f32.mrf.mxu0  ;;  %3234 = vmatmul.mubr.bf16.gmra.mxu1 %v2803_v9  ;;  %v2479_v9 = vadd.f32 %v4852_v52, %v2366_v39  ;;  %v2388_v39 = vadd.f32 %v4884_v48, %v4774_v25  ;;  %v5063_v25 = vld [vmem:[#allocation24_spill] sm:$0xff] }
 0x217   :  { %v2690_v40 = vpop.f32.mrf.mxu1  ;;  %v2759_v38 = vmax.f32 %v2685_v6, 0.0  ;;  %v2687_v44 = vadd.f32 %v2686_v15, %v2574_v22  ;;  %v2578_v13 = vadd.f32 %v2577_v51, %v4833_v50  ;;  %v2376_v15 = vadd.f32 %v4864_v30, %v4771_v17 }
 0x218   :  { %v2579_v27 = vpop.f32.mrf.mxu0  ;;  %v2501_v48 = vadd.f32 %v5063_v25, %v2388_v39 }
 0x219   :  { %v2692_v19 = vpop.f32.mrf.mxu1  ;;  %v2807_v54 = vpack.c.bf16 %v2759_v38, %v2755_v32  ;;  %v2760_v43 = vmax.f32 %v2687_v44, 0.0  ;;  %v2580_v16 = vadd.f32 %v2579_v27, %v4840_v8  ;;  %v2691_v4 = vadd.f32 %v2690_v40, %v2578_v13 }
 0x21a   :  { %v2581_v0 = vpop.f32.mrf.mxu0  ;;  %v2489_v44 = vadd.f32 %v4866_v20, %v2376_v15 }
 0x21b   :  { %v2694_v7 = vpop.f32.mrf.mxu1  ;;  %v2808_v31 = vpack.c.bf16 %v2760_v43, %v2756_v45  ;;  %v2582_v12 = vadd.f32 %v2581_v0, %v2469_v57  ;;  %v2693_v35 = vadd.f32 %v2692_v19, %v2580_v16  ;;  %v2763_v37 = vmax.f32 %v2691_v4, 0.0 }
 0x21c   :  { %v2583_v50 = vpop.f32.mrf.mxu0 }
 0x21d   :  { %v2696_v46 = vpop.f32.mrf.mxu1  ;;  %v2695_v34 = vadd.f32 %v2694_v7, %v2582_v12  ;;  %v2584_v59 = vadd.f32 %v2583_v50, %v2471_v14  ;;  %3241 = vmatprep.mubr.bf16.mxu1 %v2808_v31  ;;  %v2764_v3 = vmax.f32 %v2693_v35, 0.0  ;;  %v2386_v14 = vadd.f32 %v4878_v18, %v4771_v17 }
 0x21e   :  { %v2587_v8 = vpop.f32.mrf.mxu0  ;;  %3242 = vmatmul.mubr.bf16.gmra.mxu1 %v2807_v54 }
 0x21f   :  { %v2700_v60 = vpop.f32.mrf.mxu1  ;;  %v2767_v5 = vmax.f32 %v2695_v34, 0.0  ;;  %v2697_v55 = vadd.f32 %v2696_v46, %v2584_v59  ;;  %v2588_v61 = vadd.f32 %v2587_v8, %v4847_v58  ;;  %v5060_v34 = vld [vmem:[#allocation21_spill] sm:$0xff]  ;;  %v2499_v8 = vadd.f32 %v5061_v28, %v2386_v14 }
 0x220   :  { %v2589_v24 = vpop.f32.mrf.mxu0 }
 0x221   :  { %v2702_v36 = vpop.f32.mrf.mxu1  ;;  %v2811_v1 = vpack.c.bf16 %v2767_v5, %v2763_v37  ;;  %v2768_v23 = vmax.f32 %v2697_v55, 0.0  ;;  %v2590_v41 = vadd.f32 %v2589_v24, %v4854_v42  ;;  %v2701_v62 = vadd.f32 %v2700_v60, %v2588_v61  ;;  %v5062_v55 = vld [vmem:[#allocation23_spill] sm:$0xff] }
 0x222   :  { %v2591_v47 = vpop.f32.mrf.mxu0 }
 0x223   :  { %v2704_v53 = vpop.f32.mrf.mxu1  ;;  %v2812_v33 = vpack.c.bf16 %v2768_v23, %v2764_v3  ;;  %v2592_v49 = vadd.f32 %v2591_v47, %v2479_v9  ;;  %v2703_v52 = vadd.f32 %v2702_v36, %v2590_v41  ;;  %v2771_v40 = vmax.f32 %v2701_v62, 0.0 }
 0x224   :  { %v2593_v58 = vpop.f32.mrf.mxu0 }
 0x225   :  { %v2706_v26 = vpop.f32.mrf.mxu1  ;;  %v2705_v6 = vadd.f32 %v2704_v53, %v2592_v49  ;;  %v2594_v22 = vadd.f32 %v2593_v58, %v2481_v56  ;;  %3249 = vmatprep.mubr.bf16.mxu1 %v2812_v33  ;;  %v2772_v57 = vmax.f32 %v2703_v52, 0.0 }
 0x226   :  { %v2597_v42 = vpop.f32.mrf.mxu0  ;;  %3250 = vmatmul.mubr.bf16.gmra.mxu1 %v2811_v1 }
 0x227   :  { %v2710_v51 = vpop.f32.mrf.mxu1  ;;  %v2775_v29 = vmax.f32 %v2705_v6, 0.0  ;;  %v2707_v32 = vadd.f32 %v2706_v26, %v2594_v22  ;;  %v2598_v38 = vadd.f32 %v2597_v42, %v4861_v10 }
 0x228   :  { %v2599_v30 = vpop.f32.mrf.mxu0 }
 0x229   :  { %v2712_v13 = vpop.f32.mrf.mxu1  ;;  %v2815_v27 = vpack.c.bf16 %v2775_v29, %v2771_v40  ;;  %v2776_v19 = vmax.f32 %v2707_v32, 0.0  ;;  %v2600_v45 = vadd.f32 %v2599_v30, %v4868_v11  ;;  %v2711_v0 = vadd.f32 %v2710_v51, %v2598_v38 }
 0x22a   :  { %v2601_v54 = vpop.f32.mrf.mxu0 }
 0x22b   :  { %v2714_v43 = vpop.f32.mrf.mxu1  ;;  %v2816_v16 = vpack.c.bf16 %v2776_v19, %v2772_v57  ;;  %v2602_v7 = vadd.f32 %v2601_v54, %v2489_v44  ;;  %v2713_v20 = vadd.f32 %v2712_v13, %v2600_v45  ;;  %v2779_v46 = vmax.f32 %v2711_v0, 0.0 }
 0x22c   :  { %v2603_v10 = vpop.f32.mrf.mxu0 }
 0x22d   :  { %v2716_v31 = vpop.f32.mrf.mxu1  ;;  %v2715_v4 = vadd.f32 %v2714_v43, %v2602_v7  ;;  %v2604_v12 = vadd.f32 %v2603_v10, %v2491_v21  ;;  %3257 = vmatprep.mubr.bf16.mxu1 %v2816_v16  ;;  %v2780_v60 = vmax.f32 %v2713_v20, 0.0  ;;  %v4955_v21 = vld [vmem:[%s4980_s4] ss:$0 sm:$0xff]  ;;  %s4279_s4 = smov [#allocation10]  }
 0x22e   :  { %v2607_v11 = vpop.f32.mrf.mxu0  ;;  %3258 = vmatmul.mubr.bf16.gmra.mxu1 %v2815_v27  ;;  %s3303_s16 = sshll.u32 %s4279_s4, 4  ;;  %s3304_s16 = int_to_ptr.vmem [resolvable:$true] %s3303_s16 }
 0x22f   :  { %v2720_v50 = vpop.f32.mrf.mxu1  ;;  %v2783_v63 = vmax.f32 %v2715_v4, 0.0  ;;  %v2717_v35 = vadd.f32 %v2716_v31, %v2604_v12  ;;  %v2608_v59 = vadd.f32 %v2607_v11, %v5060_v34  ;;  %s4242_s17 = scalar_lea.vmem %s3304_s16, 2048  ;;  %p4247_p7 = scmp.lt.s32.totalorder %s3304_s16, %s3304_s16 }
 0x230   :  { %v2609_v17 = vpop.f32.mrf.mxu0  ;;  %p4243_p6 = scmp.ne.s32.totalorder %s3304_s16, %s4242_s17  ;;  %p4248_p8 = scmp.lt.s32.totalorder %s4242_s17, %s4242_s17 }
 0x231   :  { %v2722_v18 = vpop.f32.mrf.mxu1  ;;  %v2819_v37 = vpack.c.bf16 %v2783_v63, %v2779_v46  ;;  %v2784_v5 = vmax.f32 %v2717_v35, 0.0  ;;  %v2610_v61 = vadd.f32 %v2609_v17, %v5062_v55  ;;  %v2721_v3 = vadd.f32 %v2720_v50, %v2608_v59 }
 0x232   :  { %v2611_v9 = vpop.f32.mrf.mxu0  ;;  %p4249_p9 = por %p4248_p8, %p4247_p7 }
 0x233   :  { %v2724_v24 = vpop.f32.mrf.mxu1  ;;  %v2820_v36 = vpack.c.bf16 %v2784_v5, %v2780_v60  ;;  %v2612_v1 = vadd.f32 %v2611_v9, %v2499_v8  ;;  %v2723_v41 = vadd.f32 %v2722_v18, %v2610_v61  ;;  %v2787_v33 = vmax.f32 %v2721_v3, 0.0 }
 0x234   :  { %v2613_v23 = vpop.f32.mrf.mxu0  ;;  %p4250_p10 = pnand %p4249_p9, %p4243_p6 }
 0x235   :  { %v2725_v47 = vadd.f32 %v2724_v24, %v2612_v1  ;;  %v2614_v53 = vadd.f32 %v2613_v23, %v2501_v48  ;;  %3265 = vmatprep.mubr.bf16.mxu1 %v2820_v36  ;;  %v2726_v56 = vpop.f32.mrf.mxu1  ;;  %v2788_v15 = vmax.f32 %v2723_v41, 0.0 }
 0x236   :  { %3266 = vmatmul.mubr.bf16.gmra.mxu1 %v2819_v37 }
 0x237   :  { %v2791_v62 = vmax.f32 %v2725_v47, 0.0  ;;  %v2727_v49 = vadd.f32 %v2726_v56, %v2614_v53 }
 0x239   :  { %v2823_v58 = vpack.c.bf16 %v2791_v62, %v2787_v33  ;;  %v2792_v26 = vmax.f32 %v2727_v49, 0.0 }
 0x23b   :  { %v2824_v52 = vpack.c.bf16 %v2792_v26, %v2788_v15 }
 0x23d   :  { %3273 = vmatprep.mubr.bf16.mxu1 %v2824_v52 }
 0x23e   :  { %3274 = vmatmul.mubr.bf16.gmra.mxu1 %v2823_v58 }
 0x246   :  { %v3622_v6 = vpop.f32.mrf.mxu0 }
 0x248   :  { %v3623_v22 = vpop.f32.mrf.mxu0 }
 0x249   :  { %v3624_v43 = vadd.f32 %v3623_v22, %v3622_v6 }
 0x24a   :  { %v3625_v2 = vpop.f32.mrf.mxu0 }
 0x24b   :  { %v3123_v14 = vadd.f32 %v3624_v43, %v4955_v21 }
 0x24c   :  { %v3626_v42 = vpop.f32.mrf.mxu0 }
 0x24d   :  { %v3627_v10 = vadd.f32 %v3626_v42, %v3625_v2 }
 0x24e   :  { %v3628_v51 = vpop.f32.mrf.mxu0 }
 0x24f   :  { %v3126_v11 = vadd.f32 %v3627_v10, %v4955_v21 }
 0x250   :  { %v3629_v40 = vpop.f32.mrf.mxu0 }
 0x251   :  { %v3630_v50 = vadd.f32 %v3629_v40, %v3628_v51 }
 0x252   :  { %v3631_v29 = vpop.f32.mrf.mxu0 }
 0x253   :  { %v3131_v28 = vadd.f32 %v3630_v50, %v4955_v21 }
 0x254   :  { %v3632_v32 = vpop.f32.mrf.mxu0 }
 0x255   :  { %v3633_v8 = vadd.f32 %v3632_v32, %v3631_v29 }
 0x256   :  { %v3634_v38 = vpop.f32.mrf.mxu0 }
 0x257   :  { %v3134_v55 = vadd.f32 %v3633_v8, %v4955_v21 }
 0x258   :  { %v3635_v44 = vpop.f32.mrf.mxu0 }
 0x259   :  { %v3636_v61 = vadd.f32 %v3635_v44, %v3634_v38 }
 0x25a   :  { %v3637_v30 = vpop.f32.mrf.mxu0 }
 0x25b   :  { %v3139_v3 = vadd.f32 %v3636_v61, %v4955_v21 }
 0x25c   :  { %v3638_v13 = vpop.f32.mrf.mxu0 }
 0x25d   :  { %v3639_v1 = vadd.f32 %v3638_v13, %v3637_v30 }
 0x25e   :  { %v3640_v57 = vpop.f32.mrf.mxu0 }
 0x25f   :  { %v3142_v33 = vadd.f32 %v3639_v1, %v4955_v21 }
 0x260   :  { %v3641_v27 = vpop.f32.mrf.mxu0 }
 0x261   :  { %v3642_v62 = vadd.f32 %v3641_v27, %v3640_v57 }
 0x262   :  { %v3643_v19 = vpop.f32.mrf.mxu0 }
 0x263   :  { %v3147_v6 = vadd.f32 %v3642_v62, %v4955_v21 }
 0x264   :  { %v3644_v45 = vpop.f32.mrf.mxu0 }
 0x265   :  { %v3645_v22 = vadd.f32 %v3644_v45, %v3643_v19 }
 0x266   :  { %v3646_v54 = vpop.f32.mrf.mxu0 }
 0x267   :  { %v3150_v32 = vadd.f32 %v3645_v22, %v4955_v21 }
 0x268   :  { %v3647_v16 = vpop.f32.mrf.mxu0 }
 0x269   :  { %v3648_v38 = vadd.f32 %v3647_v16, %v3646_v54 }
 0x26a   :  { %v3649_v20 = vpop.f32.mrf.mxu0 }
 0x26b   :  { %v3155_v43 = vadd.f32 %v3648_v38, %v4955_v21 }
 0x26c   :  { %v3650_v63 = vpop.f32.mrf.mxu0 }
 0x26e   :  { %v3652_v18 = vpop.f32.mrf.mxu0 }
 0x270   :  { %v3653_v24 = vpop.f32.mrf.mxu0 }
 0x272   :  { %v3655_v41 = vpop.f32.mrf.mxu0 }
 0x274   :  { %v3656_v15 = vpop.f32.mrf.mxu0 }
 0x276   :  { %v3658_v42 = vpop.f32.mrf.mxu0 }
 0x278   :  { %v3659_v30 = vpop.f32.mrf.mxu0 }
 0x279   :  { %v3660_v8 = vadd.f32 %v3659_v30, %v3658_v42 }
 0x27a   :  { %v3661_v45 = vpop.f32.mrf.mxu0 }
 0x27c   :  { %v3662_v16 = vpop.f32.mrf.mxu0 }
 0x27d   :  { %v3663_v61 = vadd.f32 %v3662_v16, %v3661_v45 }
 0x2c6   :  { %v3686_v0 = vpop.f32.mrf.mxu1 }
 0x2c8   :  { %v3687_v7 = vpop.f32.mrf.mxu1 }
 0x2c9   :  { %v3688_v31 = vadd.f32 %v3687_v7, %v3686_v0  ;;  %v3651_v0 = vadd.f32 %v3650_v63, %v3649_v20  ;;  %v3664_v63 = vpop.f32.mrf.mxu0 }
 0x2ca   :  { %v3689_v4 = vpop.f32.mrf.mxu1 }
 0x2cb   :  { %v3220_v12 = vadd.f32 %v3688_v31, %v3123_v14  ;;  %v3158_v31 = vadd.f32 %v3651_v0, %v4955_v21 }
 0x2cc   :  { %v3690_v39 = vpop.f32.mrf.mxu1 }
 0x2cd   :  { %3282 = vst [vmem:[#allocation10] sm:$0xff] %v3220_v12  ;;  %v3691_v46 = vadd.f32 %v3690_v39, %v3689_v4  ;;  %v3654_v4 = vadd.f32 %v3653_v24, %v3652_v18  ;;  %v3665_v18 = vpop.f32.mrf.mxu0 }
 0x2ce   :  { %v3692_v35 = vpop.f32.mrf.mxu1  ;;  %v3666_v1 = vadd.f32 %v3665_v18, %v3664_v63 }
 0x2cf   :  { %v3223_v34 = vadd.f32 %v3691_v46, %v3126_v11  ;;  %v3163_v50 = vadd.f32 %v3654_v4, %v4955_v21  ;;  %v3657_v46 = vadd.f32 %v3656_v15, %v3655_v41  ;;  %v3667_v24 = vpop.f32.mrf.mxu0 }
 0x2d0   :  { %v3693_v59 = vpop.f32.mrf.mxu1 }
 0x2d1   :  { %3283 = vst [vmem:[#allocation10 + $0x8] sm:$0xff] %v3223_v34  ;;  %v3694_v17 = vadd.f32 %v3693_v59, %v3692_v35  ;;  %v3668_v41 = vpop.f32.mrf.mxu0 }
 0x2d2   :  { %v3695_v60 = vpop.f32.mrf.mxu1  ;;  %v3669_v62 = vadd.f32 %v3668_v41, %v3667_v24 }
 0x2d3   :  { %v3228_v37 = vadd.f32 %v3694_v17, %v3131_v28  ;;  %v3166_v28 = vadd.f32 %v3657_v46, %v4955_v21 }
 0x2d4   :  { %v3696_v5 = vpop.f32.mrf.mxu1 }
 0x2d5   :  { %3284 = vst [vmem:[#allocation10 + $0x10] sm:$0xff] %v3228_v37  ;;  %v3697_v9 = vadd.f32 %v3696_v5, %v3695_v60 }
 0x2d6   :  { %v3698_v25 = vpop.f32.mrf.mxu1 }
 0x2d7   :  { %v3231_v48 = vadd.f32 %v3697_v9, %v3134_v55  ;;  %v3171_v55 = vadd.f32 %v3660_v8, %v4955_v21 }
 0x2d8   :  { %v3699_v36 = vpop.f32.mrf.mxu1 }
 0x2d9   :  { %3285 = vst [vmem:[#allocation10 + $0x18] sm:$0xff] %v3231_v48  ;;  %v3700_v23 = vadd.f32 %v3699_v36, %v3698_v25 }
 0x2da   :  { %v3701_v47 = vpop.f32.mrf.mxu1 }
 0x2db   :  { %v3236_v53 = vadd.f32 %v3700_v23, %v3139_v3  ;;  %v3174_v3 = vadd.f32 %v3663_v61, %v4955_v21 }
 0x2dc   :  { %v3702_v56 = vpop.f32.mrf.mxu1 }
 0x2dd   :  { %3286 = vst [vmem:[#allocation10 + $0x20] sm:$0xff] %v3236_v53  ;;  %v3703_v49 = vadd.f32 %v3702_v56, %v3701_v47 }
 0x2de   :  { %v3704_v58 = vpop.f32.mrf.mxu1 }
 0x2df   :  { %v3239_v26 = vadd.f32 %v3703_v49, %v3142_v33  ;;  %v3179_v33 = vadd.f32 %v3666_v1, %v4955_v21 }
 0x2e0   :  { %v3705_v52 = vpop.f32.mrf.mxu1 }
 0x2e1   :  { %3287 = vst [vmem:[#allocation10 + $0x28] sm:$0xff] %v3239_v26  ;;  %v3706_v2 = vadd.f32 %v3705_v52, %v3704_v58  ;;  %v3182_v52 = vadd.f32 %v3669_v62, %v4955_v21 }
 0x2e2   :  { %v3707_v51 = vpop.f32.mrf.mxu1 }
 0x2e3   :  { %v3244_v40 = vadd.f32 %v3706_v2, %v3147_v6 }
 0x2e4   :  { %v3708_v29 = vpop.f32.mrf.mxu1 }
 0x2e5   :  { %3288 = vst [vmem:[#allocation10 + $0x30] sm:$0xff] %v3244_v40  ;;  %v3709_v44 = vadd.f32 %v3708_v29, %v3707_v51 }
 0x2e6   :  { %v3710_v13 = vpop.f32.mrf.mxu1 }
 0x2e7   :  { %v3247_v57 = vadd.f32 %v3709_v44, %v3150_v32 }
 0x2e8   :  { %v3711_v27 = vpop.f32.mrf.mxu1 }
 0x2e9   :  { %3289 = vst [vmem:[#allocation10 + $0x38] sm:$0xff] %v3247_v57  ;;  %v3712_v19 = vadd.f32 %v3711_v27, %v3710_v13 }
 0x2ea   :  { %v3713_v7 = vpop.f32.mrf.mxu1 }
 0x2eb   :  { %v3252_v14 = vadd.f32 %v3712_v19, %v3155_v43 }
 0x2ec   :  { %v3714_v10 = vpop.f32.mrf.mxu1 }
 0x2ed   :  { %3290 = vst [vmem:[#allocation10 + $0x40] sm:$0xff] %v3252_v14  ;;  %v3715_v54 = vadd.f32 %v3714_v10, %v3713_v7 }
 0x2ee   :  { %v3716_v12 = vpop.f32.mrf.mxu1 }
 0x2ef   :  { %v3255_v39 = vadd.f32 %v3715_v54, %v3158_v31 }
 0x2f0   :  { %v3717_v11 = vpop.f32.mrf.mxu1 }
 0x2f1   :  { %3291 = vst [vmem:[#allocation10 + $0x48] sm:$0xff] %v3255_v39  ;;  %v3718_v20 = vadd.f32 %v3717_v11, %v3716_v12 }
 0x2f2   :  { %v3719_v35 = vpop.f32.mrf.mxu1 }
 0x2f3   :  { %v3260_v34 = vadd.f32 %v3718_v20, %v3163_v50 }
 0x2f4   :  { %v3720_v59 = vpop.f32.mrf.mxu1 }
 0x2f5   :  { %3292 = vst [vmem:[#allocation10 + $0x50] sm:$0xff] %v3260_v34  ;;  %v3721_v17 = vadd.f32 %v3720_v59, %v3719_v35 }
 0x2f6   :  { %v3722_v60 = vpop.f32.mrf.mxu1 }
 0x2f7   :  { %v3263_v37 = vadd.f32 %v3721_v17, %v3166_v28 }
 0x2f8   :  { %v3723_v5 = vpop.f32.mrf.mxu1 }
 0x2f9   :  { %3293 = vst [vmem:[#allocation10 + $0x58] sm:$0xff] %v3263_v37  ;;  %v3724_v9 = vadd.f32 %v3723_v5, %v3722_v60 }
 0x2fa   :  { %v3725_v25 = vpop.f32.mrf.mxu1 }
 0x2fb   :  { %v3268_v48 = vadd.f32 %v3724_v9, %v3171_v55 }
 0x2fc   :  { %v3726_v36 = vpop.f32.mrf.mxu1 }
 0x2fd   :  { %3294 = vst [vmem:[#allocation10 + $0x60] sm:$0xff] %v3268_v48  ;;  %v3727_v23 = vadd.f32 %v3726_v36, %v3725_v25 }
 0x2fe   :  { %v3728_v47 = vpop.f32.mrf.mxu1 }
 0x2ff   :  { %v3271_v53 = vadd.f32 %v3727_v23, %v3174_v3 }
 0x300   :  { %v3729_v56 = vpop.f32.mrf.mxu1 }
 0x301   :  { %3295 = vst [vmem:[#allocation10 + $0x68] sm:$0xff] %v3271_v53  ;;  %v3730_v49 = vadd.f32 %v3729_v56, %v3728_v47 }
 0x302   :  { %v3731_v15 = vpop.f32.mrf.mxu1 }
 0x303   :  { %v3276_v58 = vadd.f32 %v3730_v49, %v3179_v33 }
 0x304   :  { %v3732_v26 = vpop.f32.mrf.mxu1 }
 0x305   :  { %3296 = vst [vmem:[#allocation10 + $0x70] sm:$0xff] %v3276_v58  ;;  %v3733_v6 = vadd.f32 %v3732_v26, %v3731_v15 }
 0x307   :  { %v3279_v22 = vadd.f32 %v3733_v6, %v3182_v52 }
 0x309   :  { %3297 = vst [vmem:[#allocation10 + $0x78] sm:$0xff] %v3279_v22 }
 0x30a   :  { %4253 = shalt.err (!%p4250_p10)
}
 0x30b   :  { %s4280_s18 = smov 128   ;;  %s4281_s19 = smov 8  }
 0x30c   :  { %3309 = dma.vmem_to_hbm [thread:$0]  %s3304_s16, 2048, %s4981_s5, [#allocation4], %s4280_s18, %s4280_s18, %s4281_s19  }
 0x30d   :  { %4268 = dma.done.wait [#allocation4], 2048  }
 0x30e   :  { %4269 = vsyncadd [#allocation4], 4294965248 }
 0x30f   :  { %3313 = vsyncpa [#allocation3], 1 }
 0x310   :  { %3314 = vsyncpa [#allocation6], 1 }
 0x311   :  { %3315 = vsyncpa [#allocation9], 1 }
 0x312   :  { %3316 = vsyncpa [#allocation4], 1 }

</bundles_post_ra>
